<compile_context>
chip_gen: v5e
topology: v5e:2x2
jax: 0.10.0
libtpu: 0.0.40
codegen_flags: <defaults>
</compile_context>

<pallas_src>
import functools
import math

import jax
import jax.numpy as jnp
import numpy as np
from jax import lax
from jax.experimental import pallas as pl
from jax.experimental.pallas import tpu as pltpu


def _layernorm(v, g, b, eps=1e-5):
    v = v.astype(jnp.float32)
    mu = jnp.mean(v, axis=-1, keepdims=True)
    var = jnp.mean(jnp.square(v - mu), axis=-1, keepdims=True)
    return (v - mu) * lax.rsqrt(var + eps) * g + b


def _perceiver_attn_kernel(x_ref, lat_ref, g1_ref, b1_ref, g2_ref, b2_ref,
                           wq_ref, wkv_ref, wout_ref, out_ref,
                           q_scr, m_scr, l_scr, acc_scr,
                           *, heads_g, dim_head, n1, block_kv):
    j = pl.program_id(2)
    n_kv_steps = pl.num_programs(2)
    inner_g = heads_g * dim_head

    # Weights arrive pre-cast to the compute dtype from the wrapper: no per-step
    # VPU cast, half the resident VMEM / weight DMA when compute_dtype=bf16.
    wkv = wkv_ref[0]                      # (D, 2*inner_g)
    compute_dtype = wkv.dtype

    def _split_heads(kv2d):
        # kv2d: (rows, 2*inner_g) f32 accumulator -> k, v as (heads_g, rows, dh).
        k = kv2d[:, :inner_g].astype(compute_dtype).reshape(-1, heads_g, dim_head)
        v = kv2d[:, inner_g:].astype(compute_dtype).reshape(-1, heads_g, dim_head)
        return pltpu.einshape("khd->hkd", k), pltpu.einshape("khd->hkd", v)

    def _online_update(k, v, score_mask=None):
        # k, v: (heads_g, rows, dh); q_scr: (heads_g, n2, dh) already scaled.
        s = jnp.einsum("hqd,hkd->hqk", q_scr[...], k,
                       preferred_element_type=jnp.float32)
        if score_mask is not None:
            # Required: keeps padded columns out of the softmax denominator l.
            s = jnp.where(score_mask, s, -jnp.inf)
        m_prev = m_scr[...]
        m_new = jnp.maximum(m_prev, jnp.max(s, axis=-1, keepdims=True))
        alpha = jnp.exp(m_prev - m_new)
        p = jnp.exp(s - m_new)
        l_scr[...] = alpha * l_scr[...] + jnp.sum(p, axis=-1, keepdims=True)
        acc_scr[...] = alpha * acc_scr[...] + jnp.einsum(
            "hqk,hkd->hqd", p.astype(compute_dtype), v,
            preferred_element_type=jnp.float32)
        m_scr[...] = m_new

    # ---- first KV step: init state, project q, fold in the latents' K/V block ----
    @pl.when(j == 0)
    def _():
        latn = _layernorm(lat_ref[0], g2_ref[...], b2_ref[...])        # (n2, D) f32
        latn_c = latn.astype(compute_dtype)
        q = jnp.dot(latn_c, wq_ref[0], preferred_element_type=jnp.float32)
        # Single softmax scale: (q * s^.25) @ (k * s^.25)^T == (q * s^.5) @ k^T
        q = q * (dim_head ** -0.5)
        q_scr[...] = pltpu.einshape(
            "qhd->hqd", q.astype(compute_dtype).reshape(-1, heads_g, dim_head))
        m_scr[...] = jnp.full(m_scr.shape, -jnp.inf, jnp.float32)
        l_scr[...] = jnp.zeros(l_scr.shape, jnp.float32)
        acc_scr[...] = jnp.zeros(acc_scr.shape, jnp.float32)

        # latents' contribution to kv_input = cat(x, latents) -- no concat needed.
        # NOTE: this unmasked block also guarantees l > 0 for the reciprocal.
        kv_lat = jnp.dot(latn_c, wkv, preferred_element_type=jnp.float32)
        k_lat, v_lat = _split_heads(kv_lat)
        _online_update(k_lat, v_lat)

    # ---- this step's x KV tile (flash-style accumulation over n1) ----
    xn = _layernorm(x_ref[0], g1_ref[...], b1_ref[...])                # (block_kv, D)
    row_valid = (j * block_kv
                 + lax.broadcasted_iota(jnp.int32, (block_kv, 1), 0)) < n1
    xn = jnp.where(row_valid, xn, 0.0)      # required: kill NaN/Inf in OOB rows
    kv = jnp.dot(xn.astype(compute_dtype), wkv, preferred_element_type=jnp.float32)
    k, v = _split_heads(kv)
    smask = (j * block_kv
             + lax.broadcasted_iota(jnp.int32, (1, 1, block_kv), 2)) < n1
    _online_update(k, v, smask)

    # ---- last KV step: normalize and apply this group's output projection ----
    @pl.when(j == n_kv_steps - 1)
    def _():
        l_val = l_scr[...]
        inv_l = pl.reciprocal(l_val, approx=True)        # EUP slot (free)
        inv_l = inv_l * (2.0 - l_val * inv_l)            # one Newton step -> f32 accuracy
        o = acc_scr[...] * inv_l                         # (heads_g, n2, dh)
        o = pltpu.einshape("hqd->qhd", o).reshape(-1, inner_g)          # (n2, inner_g)
        out_ref[0, 0] = jnp.dot(o.astype(compute_dtype), wout_ref[0],
                                preferred_element_type=jnp.float32
                                ).astype(out_ref.dtype)


def _chip_vmem_limit():
    """3/4 of physical VMEM, capped at 96 MiB (48 MiB on v7x, 96 MiB on v5e/v6e)."""
    cap = 128 * 1024 * 1024
    try:
        info_cap = int(pltpu.get_tpu_info().vmem_capacity_bytes)
        if info_cap > 0:
            cap = info_cap
    except Exception:
        pass
    return int(min(cap - cap // 4, 96 * 1024 * 1024))


def _default_block_kv(n1, D, inner_g, n2, heads_g, dim_head, vmem_limit,
                      x_bytes, w_bytes, c_bytes):
    """Largest KV tile (multiple of 256, <= 2048) whose footprint fits the budget."""
    resident = 2 * 4 * D * inner_g * w_bytes             # wq + wkv + wout, dbl-buffered
    resident += 2 * n2 * D * (x_bytes + 4)               # latents in + f32 partial out
    resident += heads_g * n2 * dim_head * (c_bytes + 4)  # q / acc scratch
    per_row = (2 * D * x_bytes                  # double-buffered x tile
               + D * 4                          # f32 LayerNorm intermediate
               + 2 * inner_g * (4 + c_bytes)    # f32 kv projection + k/v copies
               + 2 * heads_g * n2 * 4)          # f32 score / prob tiles
    budget = max(vmem_limit - resident - (8 << 20), vmem_limit // 4)
    bk = int(budget // per_row)
    bk = max(256, min(2048, (bk // 256) * 256))
    return n1 if n1 <= bk else bk


def perceiver_attention(x, latents, params, *, heads, dim_head,
                        block_kv=None, head_groups=None,
                        compute_dtype=jnp.bfloat16):
    """x: (B, n1, D) image features, latents: (B, n2, D). Returns (B, n2, D)."""
    B, n1, D = x.shape
    _, n2, _ = latents.shape
    inner = heads * dim_head
    g1, b1, g2, b2, wq, wkv, wout = params
    cdt = jnp.dtype(compute_dtype)

    if head_groups is None:
        # v7x has 2 TensorCores/chip and only B is "parallel" otherwise; split
        # heads across a second parallel axis at small batch. Near-neutral on
        # single-TC chips since the dominant projection splits exactly.
        head_groups = 2 if (heads % 2 == 0 and heads >= 2 and B <= 2) else 1
    assert heads % head_groups == 0, "head_groups must divide heads"
    heads_g = heads // head_groups
    inner_g = heads_g * dim_head

    vmem_limit = _chip_vmem_limit()
    if block_kv is None:
        block_kv = _default_block_kv(
            n1, D, inner_g, n2, heads_g, dim_head, vmem_limit,
            x.dtype.itemsize, cdt.itemsize, cdt.itemsize)
    assert block_kv == n1 or block_kv % 8 == 0, "block_kv must be a multiple of 8"
    n_kv = pl.cdiv(n1, block_kv)

    # --- pre-cast + per-head-group weight slicing (done once, outside the kernel) ---
    wq_g = wq.reshape(D, head_groups, inner_g).transpose(1, 0, 2).astype(cdt)
    wk = wkv[:, :inner].reshape(D, head_groups, inner_g)
    wv = wkv[:, inner:].reshape(D, head_groups, inner_g)
    wkv_g = jnp.concatenate([wk, wv], axis=-1).transpose(1, 0, 2).astype(cdt)
    wout_g = wout.reshape(head_groups, inner_g, D).astype(cdt)

    kernel = functools.partial(
        _perceiver_attn_kernel, heads_g=heads_g, dim_head=dim_head,
        n1=n1, block_kv=block_kv)

    flops = B * (2 * (n1 + n2) * D * 2 * inner            # kv projection
                 + 2 * n2 * D * inner                     # q projection
                 + 4 * heads * n2 * (n1 + n2) * dim_head  # scores + weighted sum
                 + 2 * n2 * inner * D)                    # output projection
    transcendentals = B * heads * n2 * (n1 + n2)
    bytes_accessed = int(
        head_groups * x.size * x.dtype.itemsize            # x streamed per group
        + latents.size * latents.dtype.itemsize
        + (wq_g.size + wkv_g.size + wout_g.size) * cdt.itemsize
        + (g1.size + b1.size + g2.size + b2.size) * 4
        + B * head_groups * n2 * D * 4)                    # f32 partial outputs
    cost = pl.CostEstimate(flops=flops, transcendentals=transcendentals,
                           bytes_accessed=bytes_accessed)

    partials = pl.pallas_call(
        kernel,
        out_shape=jax.ShapeDtypeStruct((B, head_groups, n2, D), jnp.float32),
        grid=(B, head_groups, n_kv),
        in_specs=[
            pl.BlockSpec((1, block_kv, D), lambda b, h, j: (b, j, 0)),   # x KV tile
            pl.BlockSpec((1, n2, D), lambda b, h, j: (b, 0, 0)),         # latents
            pl.BlockSpec((1, D), lambda b, h, j: (0, 0)),                # norm1 gamma
            pl.BlockSpec((1, D), lambda b, h, j: (0, 0)),                # norm1 beta
            pl.BlockSpec((1, D), lambda b, h, j: (0, 0)),                # norm2 gamma
            pl.BlockSpec((1, D), lambda b, h, j: (0, 0)),                # norm2 beta
            pl.BlockSpec((1, D, inner_g), lambda b, h, j: (h, 0, 0)),    # wq slice
            pl.BlockSpec((1, D, 2 * inner_g), lambda b, h, j: (h, 0, 0)),# wkv slice
            pl.BlockSpec((1, inner_g, D), lambda b, h, j: (h, 0, 0)),    # wout slice
        ],
        out_specs=pl.BlockSpec((1, 1, n2, D), lambda b, h, j: (b, h, 0, 0)),
        scratch_shapes=[
            pltpu.VMEM((heads_g, n2, dim_head), cdt),          # scaled q
            pltpu.VMEM((heads_g, n2, 1), jnp.float32),         # running max m
            pltpu.VMEM((heads_g, n2, 1), jnp.float32),         # running denom l
            pltpu.VMEM((heads_g, n2, dim_head), jnp.float32),  # running acc
        ],
        compiler_params=pltpu.CompilerParams(
            dimension_semantics=("parallel", "parallel", "arbitrary"),
            vmem_limit_bytes=vmem_limit),
        cost_estimate=cost,
    )(x, latents, g1, b1, g2, b2, wq_g, wkv_g, wout_g)

    # wout mixes heads linearly -> summing per-group partials is exact.
    return jnp.sum(partials, axis=1).astype(x.dtype)


def perceiver_attention_ref(x, latents, params, *, heads, dim_head):
    """Pure-JAX reference mirroring the PyTorch forward."""
    g1, b1, g2, b2, wq, wkv, wout = params
    xn = _layernorm(x, g1[0], b1[0])
    latn = _layernorm(latents, g2[0], b2[0])
    b, l, _ = latn.shape
    inner = heads * dim_head

    q = latn @ wq
    kv_in = jnp.concatenate([xn, latn], axis=-2)
    kv = kv_in @ wkv
    k, v = kv[..., :inner], kv[..., inner:]

    def reshape_tensor(t):
        bs, length, _ = t.shape
        return t.reshape(bs, length, heads, -1).transpose(0, 2, 1, 3)

    q, k, v = reshape_tensor(q), reshape_tensor(k), reshape_tensor(v)
    scale = 1.0 / math.sqrt(math.sqrt(dim_head))
    w = jnp.einsum('bhqd,bhkd->bhqk', q * scale, k * scale)
    w = jax.nn.softmax(w.astype(jnp.float32), axis=-1)
    out = jnp.einsum('bhqk,bhkd->bhqd', w, v)
    out = out.transpose(0, 2, 1, 3).reshape(b, l, -1)
    return out @ wout


if __name__ == "__main__":
    B, n1, n2 = 2, 20, 8          # n1 deliberately not a multiple of block_kv
    D, dim_head, heads = 32, 8, 4
    inner = dim_head * heads
    block_kv = 8                  # 3 KV tiles, last one partially masked

    key = jax.random.PRNGKey(0)
    kx, kl, kg1, kb1, kg2, kb2, kq, kkv, ko = jax.random.split(key, 9)

    x = jax.random.normal(kx, (B, n1, D), dtype=jnp.float32)
    latents = jax.random.normal(kl, (B, n2, D), dtype=jnp.float32)

    g1 = 1.0 + 0.1 * jax.random.normal(kg1, (1, D), dtype=jnp.float32)
    b1 = 0.1 * jax.random.normal(kb1, (1, D), dtype=jnp.float32)
    g2 = 1.0 + 0.1 * jax.random.normal(kg2, (1, D), dtype=jnp.float32)
    b2 = 0.1 * jax.random.normal(kb2, (1, D), dtype=jnp.float32)
    wq = jax.random.normal(kq, (D, inner), dtype=jnp.float32) / math.sqrt(D)
    wkv = jax.random.normal(kkv, (D, 2 * inner), dtype=jnp.float32) / math.sqrt(D)
    wout = jax.random.normal(ko, (inner, D), dtype=jnp.float32) / math.sqrt(inner)

    params = (g1, b1, g2, b2, wq, wkv, wout)
    ref = perceiver_attention_ref(x, latents, params, heads=heads, dim_head=dim_head)

    # f32 MXU path, tiled KV + 2 head groups: tight match with the reference.
    out_f32 = jax.block_until_ready(
        perceiver_attention(x, latents, params, heads=heads, dim_head=dim_head,
                            block_kv=block_kv, head_groups=2,
                            compute_dtype=jnp.float32))
    np.testing.assert_allclose(np.asarray(out_f32), np.asarray(ref),
                               rtol=1e-4, atol=1e-4)

    # f32, single head group (no splitting) sanity path.
    out_hg1 = jax.block_until_ready(
        perceiver_attention(x, latents, params, heads=heads, dim_head=dim_head,
                            block_kv=block_kv, head_groups=1,
                            compute_dtype=jnp.float32))
    np.testing.assert_allclose(np.asarray(out_hg1), np.asarray(ref),
                               rtol=1e-4, atol=1e-4)

    # bf16 MXU inputs + f32 accumulation, auto block_kv / head_groups
    # (default production path): loose match.
    out_bf16 = jax.block_until_ready(
        perceiver_attention(x, latents, params, heads=heads, dim_head=dim_head,
                            compute_dtype=jnp.bfloat16))
    np.testing.assert_allclose(np.asarray(out_bf16), np.asarray(ref),
                               rtol=5e-2, atol=5e-2)

    print("KERNEL_OK")
</pallas_src>

<mosaic_0001>
module attributes {stable_mosaic.version = 11 : i64} {
  func.func @_perceiver_attn_kernel(%arg0: i32, %arg1: i32, %arg2: i32, %arg3: memref<1x8x32xf32, #tpu.memory_space<vmem>>, %arg4: memref<1x8x32xf32, #tpu.memory_space<vmem>>, %arg5: memref<1x32xf32, #tpu.memory_space<vmem>>, %arg6: memref<1x32xf32, #tpu.memory_space<vmem>>, %arg7: memref<1x32xf32, #tpu.memory_space<vmem>>, %arg8: memref<1x32xf32, #tpu.memory_space<vmem>>, %arg9: memref<1x32x16xf32, #tpu.memory_space<vmem>>, %arg10: memref<1x32x32xf32, #tpu.memory_space<vmem>>, %arg11: memref<1x16x32xf32, #tpu.memory_space<vmem>>, %arg12: memref<1x1x8x32xf32, #tpu.memory_space<vmem>>, %arg13: memref<2x8x8xf32, #tpu.memory_space<vmem>>, %arg14: memref<2x8x1xf32, #tpu.memory_space<vmem>>, %arg15: memref<2x8x1xf32, #tpu.memory_space<vmem>>, %arg16: memref<2x8x8xf32, #tpu.memory_space<vmem>>) attributes {dimension_semantics = [#tpu.dimension_semantics<parallel>, #tpu.dimension_semantics<parallel>, #tpu.dimension_semantics<arbitrary>], iteration_bounds = array<i64: 2, 2, 3>, scalar_prefetch = 0 : i64, scratch_operands = 4 : i64, tpu.core_type = #tpu.core_type<tc>, window_params = [{transform_indices = @transform_0, window_bounds = array<i64: 1, 8, 32>}, {transform_indices = @transform_1, window_bounds = array<i64: 1, 8, 32>}, {pipeline_mode = #tpu.pipeline_mode<synchronous>, transform_indices = @transform_2, window_bounds = array<i64: 1, 32>}, {pipeline_mode = #tpu.pipeline_mode<synchronous>, transform_indices = @transform_3, window_bounds = array<i64: 1, 32>}, {pipeline_mode = #tpu.pipeline_mode<synchronous>, transform_indices = @transform_4, window_bounds = array<i64: 1, 32>}, {pipeline_mode = #tpu.pipeline_mode<synchronous>, transform_indices = @transform_5, window_bounds = array<i64: 1, 32>}, {transform_indices = @transform_6, window_bounds = array<i64: 1, 32, 16>}, {transform_indices = @transform_7, window_bounds = array<i64: 1, 32, 32>}, {transform_indices = @transform_8, window_bounds = array<i64: 1, 16, 32>}, {transform_indices = @transform_9, window_bounds = array<i64: 1, 1, 8, 32>}]} {
    %c0 = arith.constant 0 : index
    %c0_0 = arith.constant 0 : index
    %c0_1 = arith.constant 0 : index
    %0 = vector.load %arg10[%c0, %c0_0, %c0_1] : memref<1x32x32xf32, #tpu.memory_space<vmem>>, vector<1x32x32xf32>
    %1 = vector.shape_cast %0 : vector<1x32x32xf32> to vector<32x32xf32>
    %c0_i32 = arith.constant 0 : i32
    %2 = arith.cmpi eq, %arg2, %c0_i32 : i32
    %3 = arith.extui %2 : i1 to i32
    %c0_i32_2 = arith.constant 0 : i32
    %4 = arith.cmpi ne, %3, %c0_i32_2 : i32
    scf.if %4 {
      %c0_45 = arith.constant 0 : index
      %c0_46 = arith.constant 0 : index
      %c0_47 = arith.constant 0 : index
      %85 = vector.load %arg4[%c0_45, %c0_46, %c0_47] : memref<1x8x32xf32, #tpu.memory_space<vmem>>, vector<1x8x32xf32>
      %86 = vector.shape_cast %85 : vector<1x8x32xf32> to vector<8x32xf32>
      %c0_48 = arith.constant 0 : index
      %c0_49 = arith.constant 0 : index
      %87 = vector.load %arg7[%c0_48, %c0_49] : memref<1x32xf32, #tpu.memory_space<vmem>>, vector<1x32xf32>
      %c0_50 = arith.constant 0 : index
      %c0_51 = arith.constant 0 : index
      %88 = vector.load %arg8[%c0_50, %c0_51] : memref<1x32xf32, #tpu.memory_space<vmem>>, vector<1x32xf32>
      %cst_52 = arith.constant dense<0.000000e+00> : vector<8xf32>
      %89 = vector.multi_reduction <add>, %86, %cst_52 [1] : vector<8x32xf32> to vector<8xf32>
      %90 = vector.shape_cast %89 : vector<8xf32> to vector<8x1xf32>
      %cst_53 = arith.constant 3.200000e+01 : f32
      %91 = vector.broadcast %cst_53 : f32 to vector<8x1xf32>
      %92 = arith.divf %90, %91 : vector<8x1xf32>
      %93 = vector.broadcast %92 : vector<8x1xf32> to vector<8x32xf32>
      %94 = arith.subf %86, %93 : vector<8x32xf32>
      %95 = arith.mulf %94, %94 : vector<8x32xf32>
      %cst_54 = arith.constant dense<0.000000e+00> : vector<8xf32>
      %96 = vector.multi_reduction <add>, %95, %cst_54 [1] : vector<8x32xf32> to vector<8xf32>
      %97 = vector.shape_cast %96 : vector<8xf32> to vector<8x1xf32>
      %cst_55 = arith.constant 3.200000e+01 : f32
      %98 = vector.broadcast %cst_55 : f32 to vector<8x1xf32>
      %99 = arith.divf %97, %98 : vector<8x1xf32>
      %100 = vector.broadcast %92 : vector<8x1xf32> to vector<8x32xf32>
      %101 = arith.subf %86, %100 : vector<8x32xf32>
      %cst_56 = arith.constant 9.99999974E-6 : f32
      %102 = vector.broadcast %cst_56 : f32 to vector<8x1xf32>
      %103 = arith.addf %99, %102 : vector<8x1xf32>
      %104 = math.rsqrt %103 : vector<8x1xf32>
      %105 = vector.broadcast %104 : vector<8x1xf32> to vector<8x32xf32>
      %106 = arith.mulf %101, %105 : vector<8x32xf32>
      %107 = vector.broadcast %87 : vector<1x32xf32> to vector<8x32xf32>
      %108 = arith.mulf %106, %107 : vector<8x32xf32>
      %109 = vector.broadcast %88 : vector<1x32xf32> to vector<8x32xf32>
      %110 = arith.addf %108, %109 : vector<8x32xf32>
      %c0_57 = arith.constant 0 : index
      %c0_58 = arith.constant 0 : index
      %c0_59 = arith.constant 0 : index
      %111 = vector.load %arg9[%c0_57, %c0_58, %c0_59] : memref<1x32x16xf32, #tpu.memory_space<vmem>>, vector<1x32x16xf32>
      %112 = vector.shape_cast %111 : vector<1x32x16xf32> to vector<32x16xf32>
      %cst_60 = arith.constant dense<0.000000e+00> : vector<8x16xf32>
      %113 = tpu.matmul %110, %112, %cst_60 {dimension_numbers = #tpu.dot_dimension_numbers<[1], [0], [0], [1], [0, 0, 1, 1], [], []>} : vector<8x32xf32>, vector<32x16xf32>, vector<8x16xf32> -> vector<8x16xf32>
      %cst_61 = arith.constant 0.353553385 : f32
      %114 = vector.broadcast %cst_61 : f32 to vector<8x16xf32>
      %115 = arith.mulf %113, %114 : vector<8x16xf32>
      %116 = vector.shape_cast %115 : vector<8x16xf32> to vector<8x2x8xf32>
      %117 = tpu.transpose %116, [1, 0, 2] : vector<8x2x8xf32> -> vector<2x8x8xf32>
      %c0_62 = arith.constant 0 : index
      %c0_63 = arith.constant 0 : index
      %c0_64 = arith.constant 0 : index
      %118 = vector.load %arg13[%c0_62, %c0_63, %c0_64] : memref<2x8x8xf32, #tpu.memory_space<vmem>>, vector<2x8x8xf32>
      tpu.vector_store %arg13[%c0_62, %c0_63, %c0_64], %117 {strides = array<i32>} : memref<2x8x8xf32, #tpu.memory_space<vmem>>, vector<2x8x8xf32>,
      %cst_65 = arith.constant 0xFF800000 : f32
      %119 = vector.broadcast %cst_65 : f32 to vector<2x8x1xf32>
      %c0_66 = arith.constant 0 : index
      %c0_67 = arith.constant 0 : index
      %c0_68 = arith.constant 0 : index
      %120 = vector.load %arg14[%c0_66, %c0_67, %c0_68] : memref<2x8x1xf32, #tpu.memory_space<vmem>>, vector<2x8x1xf32>
      tpu.vector_store %arg14[%c0_66, %c0_67, %c0_68], %119 {strides = array<i32>} : memref<2x8x1xf32, #tpu.memory_space<vmem>>, vector<2x8x1xf32>,
      %cst_69 = arith.constant 0.000000e+00 : f32
      %121 = vector.broadcast %cst_69 : f32 to vector<2x8x1xf32>
      %c0_70 = arith.constant 0 : index
      %c0_71 = arith.constant 0 : index
      %c0_72 = arith.constant 0 : index
      %122 = vector.load %arg15[%c0_70, %c0_71, %c0_72] : memref<2x8x1xf32, #tpu.memory_space<vmem>>, vector<2x8x1xf32>
      tpu.vector_store %arg15[%c0_70, %c0_71, %c0_72], %121 {strides = array<i32>} : memref<2x8x1xf32, #tpu.memory_space<vmem>>, vector<2x8x1xf32>,
      %cst_73 = arith.constant 0.000000e+00 : f32
      %123 = vector.broadcast %cst_73 : f32 to vector<2x8x8xf32>
      %c0_74 = arith.constant 0 : index
      %c0_75 = arith.constant 0 : index
      %c0_76 = arith.constant 0 : index
      %124 = vector.load %arg16[%c0_74, %c0_75, %c0_76] : memref<2x8x8xf32, #tpu.memory_space<vmem>>, vector<2x8x8xf32>
      tpu.vector_store %arg16[%c0_74, %c0_75, %c0_76], %123 {strides = array<i32>} : memref<2x8x8xf32, #tpu.memory_space<vmem>>, vector<2x8x8xf32>,
      %cst_77 = arith.constant dense<0.000000e+00> : vector<8x32xf32>
      %125 = tpu.matmul %110, %1, %cst_77 {dimension_numbers = #tpu.dot_dimension_numbers<[1], [0], [0], [1], [0, 0, 1, 1], [], []>} : vector<8x32xf32>, vector<32x32xf32>, vector<8x32xf32> -> vector<8x32xf32>
      %126 = vector.extract_strided_slice %125 {offsets = [0, 0], sizes = [8, 16], strides = [1, 1]} : vector<8x32xf32> to vector<8x16xf32>
      %127 = vector.shape_cast %126 : vector<8x16xf32> to vector<8x2x8xf32>
      %128 = vector.extract_strided_slice %125 {offsets = [0, 16], sizes = [8, 16], strides = [1, 1]} : vector<8x32xf32> to vector<8x16xf32>
      %129 = vector.shape_cast %128 : vector<8x16xf32> to vector<8x2x8xf32>
      %130 = tpu.transpose %127, [1, 0, 2] : vector<8x2x8xf32> -> vector<2x8x8xf32>
      %131 = tpu.transpose %129, [1, 0, 2] : vector<8x2x8xf32> -> vector<2x8x8xf32>
      %c0_78 = arith.constant 0 : index
      %c0_79 = arith.constant 0 : index
      %c0_80 = arith.constant 0 : index
      %132 = vector.load %arg13[%c0_78, %c0_79, %c0_80] : memref<2x8x8xf32, #tpu.memory_space<vmem>>, vector<2x8x8xf32>
      "tpu.trace_start"() <{level = 10 : i32, message = "hqd,hkd->hqk"}> : () -> ()
      %cst_81 = arith.constant dense<0.000000e+00> : vector<2x8x8xf32>
      %133 = tpu.matmul %132, %130, %cst_81 {dimension_numbers = #tpu.dot_dimension_numbers<[2], [2], [1], [1], [0, 0, 0, 1, 1, 1], [0], [0]>} : vector<2x8x8xf32>, vector<2x8x8xf32>, vector<2x8x8xf32> -> vector<2x8x8xf32>
      "tpu.trace_stop"() : () -> ()
      %c0_82 = arith.constant 0 : index
      %c0_83 = arith.constant 0 : index
      %c0_84 = arith.constant 0 : index
      %134 = vector.load %arg14[%c0_82, %c0_83, %c0_84] : memref<2x8x1xf32, #tpu.memory_space<vmem>>, vector<2x8x1xf32>
      %cst_85 = arith.constant dense<0xFF800000> : vector<2x8xf32>
      %135 = vector.multi_reduction <maximumf>, %133, %cst_85 [2] : vector<2x8x8xf32> to vector<2x8xf32>
      %136 = vector.shape_cast %135 : vector<2x8xf32> to vector<2x8x1xf32>
      %137 = arith.maximumf %134, %136 : vector<2x8x1xf32>
      %138 = arith.subf %134, %137 : vector<2x8x1xf32>
      %139 = math.exp %138 : vector<2x8x1xf32>
      %140 = vector.broadcast %137 : vector<2x8x1xf32> to vector<2x8x8xf32>
      %141 = arith.subf %133, %140 : vector<2x8x8xf32>
      %142 = math.exp %141 : vector<2x8x8xf32>
      %c0_86 = arith.constant 0 : index
      %c0_87 = arith.constant 0 : index
      %c0_88 = arith.constant 0 : index
      %143 = vector.load %arg15[%c0_86, %c0_87, %c0_88] : memref<2x8x1xf32, #tpu.memory_space<vmem>>, vector<2x8x1xf32>
      %144 = arith.mulf %139, %143 : vector<2x8x1xf32>
      %cst_89 = arith.constant dense<0.000000e+00> : vector<2x8xf32>
      %145 = vector.multi_reduction <add>, %142, %cst_89 [2] : vector<2x8x8xf32> to vector<2x8xf32>
      %146 = vector.shape_cast %145 : vector<2x8xf32> to vector<2x8x1xf32>
      %147 = arith.addf %144, %146 : vector<2x8x1xf32>
      %c0_90 = arith.constant 0 : index
      %c0_91 = arith.constant 0 : index
      %c0_92 = arith.constant 0 : index
      %148 = vector.load %arg15[%c0_90, %c0_91, %c0_92] : memref<2x8x1xf32, #tpu.memory_space<vmem>>, vector<2x8x1xf32>
      tpu.vector_store %arg15[%c0_90, %c0_91, %c0_92], %147 {strides = array<i32>} : memref<2x8x1xf32, #tpu.memory_space<vmem>>, vector<2x8x1xf32>,
      %c0_93 = arith.constant 0 : index
      %c0_94 = arith.constant 0 : index
      %c0_95 = arith.constant 0 : index
      %149 = vector.load %arg16[%c0_93, %c0_94, %c0_95] : memref<2x8x8xf32, #tpu.memory_space<vmem>>, vector<2x8x8xf32>
      %150 = vector.broadcast %139 : vector<2x8x1xf32> to vector<2x8x8xf32>
      %151 = arith.mulf %150, %149 : vector<2x8x8xf32>
      "tpu.trace_start"() <{level = 10 : i32, message = "hqk,hkd->hqd"}> : () -> ()
      %cst_96 = arith.constant dense<0.000000e+00> : vector<2x8x8xf32>
      %152 = tpu.matmul %142, %131, %cst_96 {dimension_numbers = #tpu.dot_dimension_numbers<[2], [1], [1], [2], [0, 0, 0, 1, 1, 2], [0], [0]>} : vector<2x8x8xf32>, vector<2x8x8xf32>, vector<2x8x8xf32> -> vector<2x8x8xf32>
      "tpu.trace_stop"() : () -> ()
      %153 = arith.addf %151, %152 : vector<2x8x8xf32>
      %c0_97 = arith.constant 0 : index
      %c0_98 = arith.constant 0 : index
      %c0_99 = arith.constant 0 : index
      %154 = vector.load %arg16[%c0_97, %c0_98, %c0_99] : memref<2x8x8xf32, #tpu.memory_space<vmem>>, vector<2x8x8xf32>
      tpu.vector_store %arg16[%c0_97, %c0_98, %c0_99], %153 {strides = array<i32>} : memref<2x8x8xf32, #tpu.memory_space<vmem>>, vector<2x8x8xf32>,
      %c0_100 = arith.constant 0 : index
      %c0_101 = arith.constant 0 : index
      %c0_102 = arith.constant 0 : index
      %155 = vector.load %arg14[%c0_100, %c0_101, %c0_102] : memref<2x8x1xf32, #tpu.memory_space<vmem>>, vector<2x8x1xf32>
      tpu.vector_store %arg14[%c0_100, %c0_101, %c0_102], %137 {strides = array<i32>} : memref<2x8x1xf32, #tpu.memory_space<vmem>>, vector<2x8x1xf32>,
    } else {
    }
    %c0_3 = arith.constant 0 : index
    %c0_4 = arith.constant 0 : index
    %c0_5 = arith.constant 0 : index
    %5 = vector.load %arg3[%c0_3, %c0_4, %c0_5] : memref<1x8x32xf32, #tpu.memory_space<vmem>>, vector<1x8x32xf32>
    %6 = vector.shape_cast %5 : vector<1x8x32xf32> to vector<8x32xf32>
    %c0_6 = arith.constant 0 : index
    %c0_7 = arith.constant 0 : index
    %7 = vector.load %arg5[%c0_6, %c0_7] : memref<1x32xf32, #tpu.memory_space<vmem>>, vector<1x32xf32>
    %c0_8 = arith.constant 0 : index
    %c0_9 = arith.constant 0 : index
    %8 = vector.load %arg6[%c0_8, %c0_9] : memref<1x32xf32, #tpu.memory_space<vmem>>, vector<1x32xf32>
    %cst = arith.constant dense<0.000000e+00> : vector<8xf32>
    %9 = vector.multi_reduction <add>, %6, %cst [1] : vector<8x32xf32> to vector<8xf32>
    %10 = vector.shape_cast %9 : vector<8xf32> to vector<8x1xf32>
    %cst_10 = arith.constant 3.200000e+01 : f32
    %11 = vector.broadcast %cst_10 : f32 to vector<8x1xf32>
    %12 = arith.divf %10, %11 : vector<8x1xf32>
    %13 = vector.broadcast %12 : vector<8x1xf32> to vector<8x32xf32>
    %14 = arith.subf %6, %13 : vector<8x32xf32>
    %15 = arith.mulf %14, %14 : vector<8x32xf32>
    %cst_11 = arith.constant dense<0.000000e+00> : vector<8xf32>
    %16 = vector.multi_reduction <add>, %15, %cst_11 [1] : vector<8x32xf32> to vector<8xf32>
    %17 = vector.shape_cast %16 : vector<8xf32> to vector<8x1xf32>
    %cst_12 = arith.constant 3.200000e+01 : f32
    %18 = vector.broadcast %cst_12 : f32 to vector<8x1xf32>
    %19 = arith.divf %17, %18 : vector<8x1xf32>
    %20 = vector.broadcast %12 : vector<8x1xf32> to vector<8x32xf32>
    %21 = arith.subf %6, %20 : vector<8x32xf32>
    %cst_13 = arith.constant 9.99999974E-6 : f32
    %22 = vector.broadcast %cst_13 : f32 to vector<8x1xf32>
    %23 = arith.addf %19, %22 : vector<8x1xf32>
    %24 = math.rsqrt %23 : vector<8x1xf32>
    %25 = vector.broadcast %24 : vector<8x1xf32> to vector<8x32xf32>
    %26 = arith.mulf %21, %25 : vector<8x32xf32>
    %27 = vector.broadcast %7 : vector<1x32xf32> to vector<8x32xf32>
    %28 = arith.mulf %26, %27 : vector<8x32xf32>
    %29 = vector.broadcast %8 : vector<1x32xf32> to vector<8x32xf32>
    %30 = arith.addf %28, %29 : vector<8x32xf32>
    %c8_i32 = arith.constant 8 : i32
    %31 = arith.muli %arg2, %c8_i32 : i32
    %32 = tpu.iota {dimensions = array<i32: 0>} : vector<8x1xi32>
    %33 = vector.broadcast %31 : i32 to vector<8x1xi32>
    %34 = arith.addi %33, %32 : vector<8x1xi32>
    %c20_i32 = arith.constant 20 : i32
    %35 = vector.broadcast %c20_i32 : i32 to vector<8x1xi32>
    %36 = arith.cmpi slt, %34, %35 : vector<8x1xi32>
    %cst_14 = arith.constant 0.000000e+00 : f32
    %37 = vector.shape_cast %36 : vector<8x1xi1> to vector<8x1xi1>
    %38 = vector.broadcast %37 : vector<8x1xi1> to vector<8x32xi1>
    %39 = vector.broadcast %cst_14 : f32 to vector<8x32xf32>
    %40 = arith.select %38, %30, %39 : vector<8x32xi1>, vector<8x32xf32>
    %cst_15 = arith.constant dense<0.000000e+00> : vector<8x32xf32>
    %41 = tpu.matmul %40, %1, %cst_15 {dimension_numbers = #tpu.dot_dimension_numbers<[1], [0], [0], [1], [0, 0, 1, 1], [], []>} : vector<8x32xf32>, vector<32x32xf32>, vector<8x32xf32> -> vector<8x32xf32>
    %42 = vector.extract_strided_slice %41 {offsets = [0, 0], sizes = [8, 16], strides = [1, 1]} : vector<8x32xf32> to vector<8x16xf32>
    %43 = vector.shape_cast %42 : vector<8x16xf32> to vector<8x2x8xf32>
    %44 = vector.extract_strided_slice %41 {offsets = [0, 16], sizes = [8, 16], strides = [1, 1]} : vector<8x32xf32> to vector<8x16xf32>
    %45 = vector.shape_cast %44 : vector<8x16xf32> to vector<8x2x8xf32>
    %46 = tpu.transpose %43, [1, 0, 2] : vector<8x2x8xf32> -> vector<2x8x8xf32>
    %47 = tpu.transpose %45, [1, 0, 2] : vector<8x2x8xf32> -> vector<2x8x8xf32>
    %c8_i32_16 = arith.constant 8 : i32
    %48 = arith.muli %arg2, %c8_i32_16 : i32
    %49 = tpu.iota {dimensions = array<i32: 2>} : vector<1x1x8xi32>
    %50 = vector.broadcast %48 : i32 to vector<1x1x8xi32>
    %51 = arith.addi %50, %49 : vector<1x1x8xi32>
    %c20_i32_17 = arith.constant 20 : i32
    %52 = vector.broadcast %c20_i32_17 : i32 to vector<1x1x8xi32>
    %53 = arith.cmpi slt, %51, %52 : vector<1x1x8xi32>
    %c0_18 = arith.constant 0 : index
    %c0_19 = arith.constant 0 : index
    %c0_20 = arith.constant 0 : index
    %54 = vector.load %arg13[%c0_18, %c0_19, %c0_20] : memref<2x8x8xf32, #tpu.memory_space<vmem>>, vector<2x8x8xf32>
    "tpu.trace_start"() <{level = 10 : i32, message = "hqd,hkd->hqk"}> : () -> ()
    %cst_21 = arith.constant dense<0.000000e+00> : vector<2x8x8xf32>
    %55 = tpu.matmul %54, %46, %cst_21 {dimension_numbers = #tpu.dot_dimension_numbers<[2], [2], [1], [1], [0, 0, 0, 1, 1, 1], [0], [0]>} : vector<2x8x8xf32>, vector<2x8x8xf32>, vector<2x8x8xf32> -> vector<2x8x8xf32>
    %cst_22 = arith.constant 0xFF800000 : f32
    "tpu.trace_stop"() : () -> ()
    %56 = vector.shape_cast %53 : vector<1x1x8xi1> to vector<1x1x8xi1>
    %57 = vector.broadcast %56 : vector<1x1x8xi1> to vector<2x8x8xi1>
    %58 = vector.broadcast %cst_22 : f32 to vector<2x8x8xf32>
    %59 = arith.select %57, %55, %58 : vector<2x8x8xi1>, vector<2x8x8xf32>
    %c0_23 = arith.constant 0 : index
    %c0_24 = arith.constant 0 : index
    %c0_25 = arith.constant 0 : index
    %60 = vector.load %arg14[%c0_23, %c0_24, %c0_25] : memref<2x8x1xf32, #tpu.memory_space<vmem>>, vector<2x8x1xf32>
    %cst_26 = arith.constant dense<0xFF800000> : vector<2x8xf32>
    %61 = vector.multi_reduction <maximumf>, %59, %cst_26 [2] : vector<2x8x8xf32> to vector<2x8xf32>
    %62 = vector.shape_cast %61 : vector<2x8xf32> to vector<2x8x1xf32>
    %63 = arith.maximumf %60, %62 : vector<2x8x1xf32>
    %64 = arith.subf %60, %63 : vector<2x8x1xf32>
    %65 = math.exp %64 : vector<2x8x1xf32>
    %66 = vector.broadcast %63 : vector<2x8x1xf32> to vector<2x8x8xf32>
    %67 = arith.subf %59, %66 : vector<2x8x8xf32>
    %68 = math.exp %67 : vector<2x8x8xf32>
    %c0_27 = arith.constant 0 : index
    %c0_28 = arith.constant 0 : index
    %c0_29 = arith.constant 0 : index
    %69 = vector.load %arg15[%c0_27, %c0_28, %c0_29] : memref<2x8x1xf32, #tpu.memory_space<vmem>>, vector<2x8x1xf32>
    %70 = arith.mulf %65, %69 : vector<2x8x1xf32>
    %cst_30 = arith.constant dense<0.000000e+00> : vector<2x8xf32>
    %71 = vector.multi_reduction <add>, %68, %cst_30 [2] : vector<2x8x8xf32> to vector<2x8xf32>
    %72 = vector.shape_cast %71 : vector<2x8xf32> to vector<2x8x1xf32>
    %73 = arith.addf %70, %72 : vector<2x8x1xf32>
    %c0_31 = arith.constant 0 : index
    %c0_32 = arith.constant 0 : index
    %c0_33 = arith.constant 0 : index
    %74 = vector.load %arg15[%c0_31, %c0_32, %c0_33] : memref<2x8x1xf32, #tpu.memory_space<vmem>>, vector<2x8x1xf32>
    tpu.vector_store %arg15[%c0_31, %c0_32, %c0_33], %73 {strides = array<i32>} : memref<2x8x1xf32, #tpu.memory_space<vmem>>, vector<2x8x1xf32>,
    %c0_34 = arith.constant 0 : index
    %c0_35 = arith.constant 0 : index
    %c0_36 = arith.constant 0 : index
    %75 = vector.load %arg16[%c0_34, %c0_35, %c0_36] : memref<2x8x8xf32, #tpu.memory_space<vmem>>, vector<2x8x8xf32>
    %76 = vector.broadcast %65 : vector<2x8x1xf32> to vector<2x8x8xf32>
    %77 = arith.mulf %76, %75 : vector<2x8x8xf32>
    "tpu.trace_start"() <{level = 10 : i32, message = "hqk,hkd->hqd"}> : () -> ()
    %cst_37 = arith.constant dense<0.000000e+00> : vector<2x8x8xf32>
    %78 = tpu.matmul %68, %47, %cst_37 {dimension_numbers = #tpu.dot_dimension_numbers<[2], [1], [1], [2], [0, 0, 0, 1, 1, 2], [0], [0]>} : vector<2x8x8xf32>, vector<2x8x8xf32>, vector<2x8x8xf32> -> vector<2x8x8xf32>
    "tpu.trace_stop"() : () -> ()
    %79 = arith.addf %77, %78 : vector<2x8x8xf32>
    %c0_38 = arith.constant 0 : index
    %c0_39 = arith.constant 0 : index
    %c0_40 = arith.constant 0 : index
    %80 = vector.load %arg16[%c0_38, %c0_39, %c0_40] : memref<2x8x8xf32, #tpu.memory_space<vmem>>, vector<2x8x8xf32>
    tpu.vector_store %arg16[%c0_38, %c0_39, %c0_40], %79 {strides = array<i32>} : memref<2x8x8xf32, #tpu.memory_space<vmem>>, vector<2x8x8xf32>,
    %c0_41 = arith.constant 0 : index
    %c0_42 = arith.constant 0 : index
    %c0_43 = arith.constant 0 : index
    %81 = vector.load %arg14[%c0_41, %c0_42, %c0_43] : memref<2x8x1xf32, #tpu.memory_space<vmem>>, vector<2x8x1xf32>
    tpu.vector_store %arg14[%c0_41, %c0_42, %c0_43], %63 {strides = array<i32>} : memref<2x8x1xf32, #tpu.memory_space<vmem>>, vector<2x8x1xf32>,
    %c2_i32 = arith.constant 2 : i32
    %82 = arith.cmpi eq, %arg2, %c2_i32 : i32
    %83 = arith.extui %82 : i1 to i32
    %c0_i32_44 = arith.constant 0 : i32
    %84 = arith.cmpi ne, %83, %c0_i32_44 : i32
    scf.if %84 {
      %c0_45 = arith.constant 0 : index
      %c0_46 = arith.constant 0 : index
      %c0_47 = arith.constant 0 : index
      %85 = vector.load %arg15[%c0_45, %c0_46, %c0_47] : memref<2x8x1xf32, #tpu.memory_space<vmem>>, vector<2x8x1xf32>
      %86 = tpu.reciprocal %85 {approx = true} : vector<2x8x1xf32> -> vector<2x8x1xf32>
      %87 = arith.mulf %85, %86 : vector<2x8x1xf32>
      %cst_48 = arith.constant 2.000000e+00 : f32
      %88 = vector.broadcast %cst_48 : f32 to vector<2x8x1xf32>
      %89 = arith.subf %88, %87 : vector<2x8x1xf32>
      %90 = arith.mulf %86, %89 : vector<2x8x1xf32>
      %c0_49 = arith.constant 0 : index
      %c0_50 = arith.constant 0 : index
      %c0_51 = arith.constant 0 : index
      %91 = vector.load %arg16[%c0_49, %c0_50, %c0_51] : memref<2x8x8xf32, #tpu.memory_space<vmem>>, vector<2x8x8xf32>
      %92 = vector.broadcast %90 : vector<2x8x1xf32> to vector<2x8x8xf32>
      %93 = arith.mulf %91, %92 : vector<2x8x8xf32>
      %94 = tpu.transpose %93, [1, 0, 2] : vector<2x8x8xf32> -> vector<8x2x8xf32>
      %95 = vector.shape_cast %94 : vector<8x2x8xf32> to vector<8x16xf32>
      %c0_52 = arith.constant 0 : index
      %c0_53 = arith.constant 0 : index
      %c0_54 = arith.constant 0 : index
      %96 = vector.load %arg11[%c0_52, %c0_53, %c0_54] : memref<1x16x32xf32, #tpu.memory_space<vmem>>, vector<1x16x32xf32>
      %97 = vector.shape_cast %96 : vector<1x16x32xf32> to vector<16x32xf32>
      %cst_55 = arith.constant dense<0.000000e+00> : vector<8x32xf32>
      %98 = tpu.matmul %95, %97, %cst_55 {dimension_numbers = #tpu.dot_dimension_numbers<[1], [0], [0], [1], [0, 0, 1, 1], [], []>} : vector<8x16xf32>, vector<16x32xf32>, vector<8x32xf32> -> vector<8x32xf32>
      %c0_56 = arith.constant 0 : index
      %c0_57 = arith.constant 0 : index
      %c0_58 = arith.constant 0 : index
      %c0_59 = arith.constant 0 : index
      %99 = vector.load %arg12[%c0_56, %c0_57, %c0_58, %c0_59] : memref<1x1x8x32xf32, #tpu.memory_space<vmem>>, vector<1x1x8x32xf32>
      %100 = vector.shape_cast %99 : vector<1x1x8x32xf32> to vector<8x32xf32>
      %101 = vector.shape_cast %98 : vector<8x32xf32> to vector<1x1x8x32xf32>
      tpu.vector_store %arg12[%c0_56, %c0_57, %c0_58, %c0_59], %101 {strides = array<i32>} : memref<1x1x8x32xf32, #tpu.memory_space<vmem>>, vector<1x1x8x32xf32>,
    } else {
    }
    return
  }
  func.func @transform_0(%arg0: i32, %arg1: i32, %arg2: i32) -> (i32, i32, i32) {
    %c0_i32 = arith.constant 0 : i32
    %c0_i32_0 = arith.constant 0 : i32
    return %arg0, %arg2, %c0_i32 : i32, i32, i32
  }
  func.func @transform_1(%arg0: i32, %arg1: i32, %arg2: i32) -> (i32, i32, i32) {
    %c0_i32 = arith.constant 0 : i32
    %c0_i32_0 = arith.constant 0 : i32
    %c0_i32_1 = arith.constant 0 : i32
    return %arg0, %c0_i32, %c0_i32_0 : i32, i32, i32
  }
  func.func @transform_2(%arg0: i32, %arg1: i32, %arg2: i32) -> (i32, i32) {
    %c0_i32 = arith.constant 0 : i32
    %c0_i32_0 = arith.constant 0 : i32
    %c0_i32_1 = arith.constant 0 : i32
    return %c0_i32, %c0_i32_0 : i32, i32
  }
  func.func @transform_3(%arg0: i32, %arg1: i32, %arg2: i32) -> (i32, i32) {
    %c0_i32 = arith.constant 0 : i32
    %c0_i32_0 = arith.constant 0 : i32
    %c0_i32_1 = arith.constant 0 : i32
    return %c0_i32, %c0_i32_0 : i32, i32
  }
  func.func @transform_4(%arg0: i32, %arg1: i32, %arg2: i32) -> (i32, i32) {
    %c0_i32 = arith.constant 0 : i32
    %c0_i32_0 = arith.constant 0 : i32
    %c0_i32_1 = arith.constant 0 : i32
    return %c0_i32, %c0_i32_0 : i32, i32
  }
  func.func @transform_5(%arg0: i32, %arg1: i32, %arg2: i32) -> (i32, i32) {
    %c0_i32 = arith.constant 0 : i32
    %c0_i32_0 = arith.constant 0 : i32
    %c0_i32_1 = arith.constant 0 : i32
    return %c0_i32, %c0_i32_0 : i32, i32
  }
  func.func @transform_6(%arg0: i32, %arg1: i32, %arg2: i32) -> (i32, i32, i32) {
    %c0_i32 = arith.constant 0 : i32
    %c0_i32_0 = arith.constant 0 : i32
    %c0_i32_1 = arith.constant 0 : i32
    return %arg1, %c0_i32, %c0_i32_0 : i32, i32, i32
  }
  func.func @transform_7(%arg0: i32, %arg1: i32, %arg2: i32) -> (i32, i32, i32) {
    %c0_i32 = arith.constant 0 : i32
    %c0_i32_0 = arith.constant 0 : i32
    %c0_i32_1 = arith.constant 0 : i32
    return %arg1, %c0_i32, %c0_i32_0 : i32, i32, i32
  }
  func.func @transform_8(%arg0: i32, %arg1: i32, %arg2: i32) -> (i32, i32, i32) {
    %c0_i32 = arith.constant 0 : i32
    %c0_i32_0 = arith.constant 0 : i32
    %c0_i32_1 = arith.constant 0 : i32
    return %arg1, %c0_i32, %c0_i32_0 : i32, i32, i32
  }
  func.func @transform_9(%arg0: i32, %arg1: i32, %arg2: i32) -> (i32, i32, i32, i32) {
    %c0_i32 = arith.constant 0 : i32
    %c0_i32_0 = arith.constant 0 : i32
    %c0_i32_1 = arith.constant 0 : i32
    return %arg0, %arg1, %c0_i32, %c0_i32_0 : i32, i32, i32, i32
  }
}

</mosaic_0001>

<bundles_post_ra>
// kernel: tpu_custom_call.1
= control target key start
LH: loop header
LB: loop body
LE: loop exit
PB: predicated region body
PF: predicated region fallthrough
CT: control target
= control target key end

     0   :  { %s2598_s0 = inlined_call_operand.vmem [shape: f32[2,20,32], index: 0, kind: input, shape index: {}]   ;;  %s2599_s1 = inlined_call_operand.vmem [shape: f32[2,8,32], index: 1, kind: input, shape index: {}]   ;;  %s2600_s2 = inlined_call_operand.vmem [shape: f32[1,32], index: 2, kind: input, shape index: {}]   ;;  %s2601_s3 = inlined_call_operand.vmem [shape: f32[1,32], index: 3, kind: input, shape index: {}]   ;;  %s2602_s4 = inlined_call_operand.vmem [shape: f32[1,32], index: 4, kind: input, shape index: {}]   ;;  %s2603_s5 = inlined_call_operand.vmem [shape: f32[1,32], index: 5, kind: input, shape index: {}]   ;;  %s2604_s6 = inlined_call_operand.vmem [shape: f32[2,32,16], index: 6, kind: input, shape index: {}]   ;;  %s2605_s7 = inlined_call_operand.vmem [shape: f32[2,32,32], index: 7, kind: input, shape index: {}]   ;;  %s2606_s8 = inlined_call_operand.vmem [shape: f32[2,16,32], index: 8, kind: input, shape index: {}]   ;;  %s2607_s9 = inlined_call_operand.hbm [shape: f32[2,2,8,32], index: 9, kind: output, shape index: {}]  }
   0x1   :  { %2623 = sst [smem:[#allocation22_spill]] %s2607_s9 }
   0x2   :  { %14 = vsyncpa [#allocation7], 0 }
   0x3   :  { %16 = vsyncpa [#allocation7 + $0x1], 0  ;;  %s2109_s30 = smov 0   ;;  %s2111_s10 = smov 0  }
   0x4   :  { %s2113_s11 = smov 0   ;;  %s2115_s12 = smov 0  }
   0x5   :  { %s2117_s13 = smov 0   ;;  %s2119_s14 = smov 0  }
   0x6   :  { %s2121_s15 = smov 0   ;;  %s2123_s16 = smov 0  }
   0x7   :  { %s2125_s17 = smov 0   ;;  %s2127_s18 = smov 0  }
   0x8 LB: > { %2624 = sst [smem:[#allocation9_spill]] %s2005_s30  ;;  %s1738_s19 = sadd.s32 4294967295, %s2041_s18   ;;  %s2041_s18 = sphi %s2127_s18, %s22_s18   ;;  %s2037_s17 = sphi %s2125_s17, %s2655_s17   ;;  %s2033_s16 = sphi %s2123_s16, %s2654_s16   ;;  %s2029_s15 = sphi %s2121_s15, %s2653_s15   ;;  %s2025_s14 = sphi %s2119_s14, %s2652_s14   ;;  %s2021_s13 = sphi %s2117_s13, %s2651_s13   ;;  %s2017_s12 = sphi %s2115_s12, %s2650_s12   ;;  %s2013_s11 = sphi %s2113_s11, %s2649_s11   ;;  %s2009_s10 = sphi %s2111_s10, %s2648_s10   ;;  %s2005_s30 = sphi %s2109_s30, %s2647_s30  }
   0x9   : > { %2625 = sst [smem:[#allocation10_spill]] %s2009_s10  ;;  %s1739_s20 = sadd.s32 4294967294, %s2041_s18  }
   0xa   : > { %2626 = sst [smem:[#allocation11_spill]] %s2013_s11  ;;  %s34_s21 = sadd.s32 1, %s2029_s15 }
   0xb   : > { %2627 = sst [smem:[#allocation12_spill]] %s2029_s15  ;;  %p35_p0 = scmp.ge.s32.totalorder %s34_s21, 3 }
   0xc   : > { %2628 = sst [smem:[#allocation13_spill]] %s2033_s16  ;;  %s37_s22 = sadd.s32 1, %s2033_s16 }
   0xd   : > { %2629 = sst [smem:[#allocation14_spill]] %s2037_s17  ;;  %s41_s23 = sadd.s32 1, %s2037_s17 }
   0xe   : > { %2630 = sst [smem:[#allocation15_spill]] %s2041_s18  ;;  %p276_p1 = scmp.ne.s32.totalorder %s2013_s11, %s2009_s10 }
   0xf   : > { %s2657_s21 = smov (%p35_p0, %s34_s21), 0  ;;  %s2659_s22 = smov (!%p35_p0, %s37_s22), %s2033_s16 }
  0x10   : > { %2631 = sst [smem:[#allocation16_spill]] %s2657_s21  ;;  %p277_p2 = scmp.eq.s32.totalorder %s1738_s19, 11 }
  0x11   : > { %p282_p3 = scmp.ne.s32.totalorder %s2009_s10, %s2005_s30  ;;  %p39_p4 = scmp.ge.s32.totalorder %s2659_s22, 2 }
  0x12   : > { %p283_p5 = scmp.eq.s32.totalorder %s1739_s20, 11  ;;  %p2171_p6 = por %p277_p2, %p276_p1 }
  0x13   : > { %s2661_s22 = smov (%p39_p4, %s2659_s22), 0  ;;  %s2663_s23 = smov (!%p39_p4, %s41_s23), %s2037_s17 }
  0x14   : > { %s2632_s24 = scalar_select %p2171_p6, 1, 0 }
  0x15   : > { %2634 = sst [smem:[#allocation18_spill]] %s2661_s22  ;;  %p2178_p7 = por %p283_p5, %p282_p3 }
  0x16   : > { %2633 = sst [smem:[#allocation17_spill]] %s2632_s24  ;;  %p1742_p8 = scmp.ge.s32.totalorder %s2041_s18, 1 }
  0x17   : > { %s2635_s25 = scalar_select %p2178_p7, 1, 0 }
  0x18   : > { %p43_p9 = scmp.ge.s32.totalorder %s2663_s23, 2  ;;  %p355_p10 = scmp.lt.s32.totalorder %s2041_s18, 13 }
  0x19   : > { %2636 = sst [smem:[#allocation19_spill]] %s2635_s25  ;;  %s262_s26 = ssub.s32 %s2033_s16, %s2661_s22 }
  0x1a   : > { %s2665_s23 = smov (%p43_p9, %s2663_s23), 0  ;;  %p356_p11 = pnand %p1742_p8, %p355_p10 }
  0x1b   : > { %2637 = sst [smem:[#allocation20_spill]] %s2665_s23  ;;  %s261_s27 = ssub.s32 %s2037_s17, %s2665_s23 }
  0x1c   : > { %s263_s28 = sor.u32 %s262_s26, %s261_s27  ;;  %s266_s29 = sadd.s32 1, %s2013_s11 }
  0x1d   : > { %p264_p12 = scmp.eq.s32.totalorder %s263_s28, 0  ;;  %359 = sbr.rel (%p356_p11) target bundleno = 2586 (0xa1a), region = 56 }
  0x1e   : > { %s2615_s20 = sand.u32 (!%p356_p11), 1, %s2009_s10   ;;  %p413_p13 = scmp.lt.s32.totalorder (!%p356_p11), %s2025_s14, 1 }
  0x1f   : > { %s2192_s19 = scalar_select %p264_p12, %s2013_s11, %s266_s29  }
  0x20   : > { %s2198_s22 = sshll.u32 (!%p356_p11), %s2615_s20, 3  ;;  %p415_p0 = scmp.lt.s32.totalorder (!%p356_p11), %s2017_s12, 2 }
  0x21   : > { %2638 = sst [smem:[#allocation21_spill]] %s2192_s19  ;;  %p425_p1 = scmp.lt.s32.totalorder (!%p356_p11), %s2021_s13, 1 }
  0x22   : > { %s414_s26 = scalar_select %p413_p13, %s2025_s14, 1 }
  0x23   : > { %s416_s27 = scalar_select %p415_p0, %s2017_s12, 2 }
  0x24   : > { %s1779_s28 = smul.u32 3, %s414_s26  ;;  %s1745_s29 = sshll.u32 %s414_s26, 3 }
  0x25   : > { %s424_s17 = scalar_lea.vmem %s2599_s1, %s1745_s29  ;;  %s412_s9 = scalar_lea.vmem [#allocation6], %s2198_s22 }
  0x26   : > { %s418_s16 = sadd.s32 %s1779_s28, %s416_s27  ;;  %p1752_p2 = scmp.ne.s32.totalorder %s2017_s12, 0 }
  0x27   : > { %s1744_s15 = sshll.u32 %s418_s16, 3 }
  0x28   : > { %s2210_s25 = scalar_lea.vmem %s2598_s0, %s1744_s15 }
  0x29   : > { %s426_s20 = scalar_select %p425_p1, %s2021_s13, 1 }
  0x2a   : > { %447 = sbr.rel (%p1752_p2) target bundleno = 1107 (0x453), region = 60 }
  0x2b   : > { %s1776_s30 = sshll.u32 %s426_s20, 5  ;;  %s1778_s18 = sshll.u32 %s426_s20, 4 }
  0x2c   : > { %s2216_s26 = scalar_lea.vmem %s2604_s6, %s1776_s30  ;;  %s434_s23 = scalar_lea.vmem %s2605_s7, %s1776_s30 }
  0x2d   : > { %s2224_s16 = scalar_lea.vmem %s2606_s8, %s1778_s18  ;;  %v2226_v0 = vld [vmem:[%s434_s23] sm:$0xff]  ;;  %v2228_v1 = vld [vmem:[%s434_s23 + $0x8] sm:$0xff]  ;;  %v2230_v2 = vld [vmem:[%s434_s23 + $0x10] sm:$0xff]  ;;  %s2047_s18 = smov (!%p1752_p2), 112  }
  0x2e   : > { %v2232_v3 = vld [vmem:[%s434_s23 + $0x18] sm:$0xff] }
  0x2f   : > { %v448_v4 = vld [vmem:[%s424_s17] sm:$0xff]  ;;  %vm451_vm0 = vcmask 261120   ;;  %634 = vmatpush.msra.mxu1 %v2232_v3  ;;  %v2043_v6 = vmov 32.0   ;;  %v492_v18 = vld [vmem:[%s2216_s26 + $0x18] sm:$0xff]  ;;  %v491_v19 = vld [vmem:[%s2216_s26 + $0x10] sm:$0xff]  ;;  %s2044_s17 = smov 120  }
  0x30   : > { %v452_v5 = vsel %vm451_vm0, %v448_v4, 0.0  ;;  %1893 = vrcp.f32 %v2043_v6  ;;  %508 = vmatpush.msra.mxu0 %v492_v18  ;;  %v490_v20 = vld [vmem:[%s2216_s26 + $0x8] sm:$0xff]  ;;  %v489_v21 = vld [vmem:[%s2216_s26] sm:$0xff]  ;;  %v2045_v40 = vmov 1983009808   ;;  %vm522_vm5 = vcmask 1047556  }
  0x31   : > { %453 = vadd.xlane.f32.xlu0 %v452_v5  ;;  %635 = vmatpush.msra.mxu1 %v2230_v2  ;;  %v1891_v31 = vld [vmem:[%s2602_s4] ss:$0 sm:$0xff]  ;;  %v525_v41 = vunpack.c.l.s4 %v2045_v40  ;;  %v2046_v44 = vmov 1934713408   ;;  %vm612_vm6 = vcmask 64512   ;;  %vm615_vm7 = vcmask 7168  }
  0x32   : > { %509 = vmatpush.msra.mxu0 %v491_v19  ;;  %v1892_v34 = vld [vmem:[%s2603_s5] ss:$0 sm:$0xff]  ;;  %v547_v45 = vunpack.c.l.s4 %v2046_v44 }
  0x33   : > { %636 = vmatpush.msra.mxu1 %v2228_v1  ;;  %v2254_v43 = vunpack.c.0.s8 %v525_v41 }
  0x34   : > { %510 = vmatpush.msra.mxu0 %v490_v20  ;;  %v2259_v50 = vunpack.c.0.s8 %v547_v45 }
  0x35   : > { %637 = vmatpush.msra.mxu1 %v2226_v0 }
  0x36   : > { %v1894_v7 = vpop.eup %1893  ;;  %511 = vmatpush.msra.mxu0 %v489_v21 }
  0x37   : > { %v456_v8 = vmul.f32 32.0, %v1894_v7  ;;  %vm460_vm1 = vweird.f32 %v1894_v7 }
  0x39   : > { %v457_v9 = vsub.f32 1.0, %v456_v8 }
  0x3b   : > { %v458_v10 = vmul.f32 %v1894_v7, %v457_v9 }
  0x3d   : > { %v459_v11 = vadd.f32 %v1894_v7, %v458_v10 }
  0x3f   : > { %v461_v12 = vsel %vm460_vm1, %v1894_v7, %v459_v11 }
  0xa4   : > { %v454_v13 = vpop.xlane.xlu0 %453 }
  0xa5   : > { %v462_v14 = vmul.f32 %v461_v12, %v454_v13 }
  0xa7   : > { %v463_v15 = vsub.f32 %v448_v4, %v462_v14 }
  0xa9   : > { %v464_v16 = vmul.f32 %v463_v15, %v463_v15 }
  0xab   : > { %v465_v17 = vsel %vm451_vm0, %v464_v16, 0.0 }
  0xac   : > { %466 = vadd.xlane.f32.xlu0 %v465_v17 }
 0x11f   : > { %v467_v22 = vpop.xlane.xlu0 %466 }
 0x120   : > { %v468_v23 = vmul.f32 %v467_v22, %v461_v12 }
 0x122   : > { %v469_v24 = vadd.f32 1e-05, %v468_v23 }
 0x124   : > { %1895 = vrsqrt.f32 %v469_v24  ;;  %vm476_vm3 = vweird.f32 %v469_v24 }
 0x12a   : > { %v1896_v25 = vpop.eup %1895 }
 0x12b   : > { %v471_v26 = vmul.f32 %v1896_v25, %v469_v24  ;;  %vm477_vm2 = vweird.f32 %v1896_v25 }
 0x12c   : > { %vm478_vm4 = vmor %vm476_vm3, %vm477_vm2 }
 0x12d   : > { %v472_v27 = vmul.f32 %v1896_v25, %v471_v26 }
 0x12f   : > { %v473_v28 = vmul.f32 0.5, %v472_v27 }
 0x131   : > { %v474_v29 = vsub.f32 1.5, %v473_v28 }
 0x133   : > { %v475_v30 = vmul.f32 %v1896_v25, %v474_v29 }
 0x135   : > { %v479_v32 = vsel %vm478_vm4, %v1896_v25, %v475_v30 }
 0x136   : > { %v480_v33 = vmul.f32 %v479_v32, %v463_v15 }
 0x138   : > { %v484_v35 = vmul.f32 %v1891_v31, %v480_v33 }
 0x13a   : > { %v488_v36 = vadd.f32 %v1892_v34, %v484_v35 }
 0x13c   : > { %1753 = vmatmul.msk.f32.vlgmr.msra.gmra.mxu0 %vm451_vm0, %v488_v36  ;;  %1754 = vmatmul.msk.f32.vlgmr.msra.gmra.mxu1 %vm451_vm0, %v488_v36 }
 0x1b9   : > { %v513_v37 = vpop.f32.mrf.mxu0  ;;  %v639_v39 = vpop.f32.mrf.mxu1 }
 0x1ba   : > { %v516_v38 = vmul.f32 0.35355338, %v513_v37  ;;  %v646_v49 = vrot.slane %v639_v39, 4  ;;  %v651_v55 = vperm.slane %v639_v39, %v2254_v43 }
 0x1bc   : > { %518 = vrot.lane.b32.xlu1 %v516_v38, %s2044_s17  ;;  %v521_v42 = vrot.slane %v516_v38, 4  ;;  %v527_v47 = vperm.slane %v516_v38, %v2254_v43  ;;  %v647_v60 = vsel %vm522_vm5, 0.0, %v646_v49  ;;  %v668_v10 = vrot.slane %v651_v55, 4 }
 0x1bd   : > { %v655_v8 = vperm.slane %v647_v60, %v2254_v43 }
 0x1be   : > { %v523_v46 = vsel %vm522_vm5, 0.0, %v521_v42  ;;  %v544_v52 = vrot.slane %v527_v47, 4 }
 0x1bf   : > { %v531_v48 = vperm.slane %v523_v46, %v2254_v43  ;;  %v680_v23 = vrot.slane %v655_v8, 4 }
 0x1c1   : > { %v556_v59 = vrot.slane %v531_v48, 4 }
 0x1c4   : > { %643 = vrot.lane.b32.xlu1 %v639_v39, %s2044_s17 }
 0x22e   : > { %v519_v51 = vpop.permute.xlu1 %518 }
 0x22f   : > { %v532_v53 = vrot.slane %v519_v51, 4  ;;  %v537_v54 = vperm.slane %v519_v51, %v2254_v43 }
 0x231   : > { %v533_v56 = vsel %vm522_vm5, 0.0, %v532_v53  ;;  %v542_v57 = vrot.slane %v537_v54, 4  ;;  %v545_v58 = vsel %vm522_vm5, %v537_v54, %v544_v52 }
 0x232   : > { %v541_v61 = vperm.slane %v533_v56, %v2254_v43  ;;  %v553_v62 = vperm.slane %v545_v58, %v2259_v50 }
 0x233   : > { %v543_v63 = vsel %vm522_vm5, %v542_v57, %v527_v47 }
 0x234   : > { %v549_v4 = vperm.slane %v543_v63, %v2259_v50  ;;  %v554_v5 = vrot.slane %v541_v61, 4  ;;  %v557_v6 = vsel %vm522_vm5, %v541_v61, %v556_v59  ;;  %v568_v7 = vrot.slane %v553_v62, 4 }
 0x235   : > { %v565_v9 = vperm.slane %v557_v6, %v2259_v50 }
 0x236   : > { %v555_v11 = vsel %vm522_vm5, %v554_v5, %v531_v48  ;;  %v566_v12 = vrot.slane %v549_v4, 4  ;;  %v569_v13 = vsel %vm522_vm5, 0.0, %v568_v7  ;;  %v644_v14 = vpop.permute.xlu1 %643  ;;  %v574_v17 = vsel %vm522_vm5, %v568_v7, %v549_v4 }
 0x237   : > { %v561_v15 = vperm.slane %v555_v11, %v2259_v50  ;;  %v572_v16 = vrot.slane %v565_v9, 4  ;;  %v579_v18 = vrot.slane %v569_v13, 4  ;;  %v656_v20 = vrot.slane %v644_v14, 4 }
 0x238   : > { %v567_v19 = vsel %vm522_vm5, 0.0, %v566_v12  ;;  %v661_v21 = vperm.slane %v644_v14, %v2254_v43  ;;  %v1883_v22 = vpack.i.bf16 %v644_v14, %v639_v39  ;;  %v578_v27 = vperm.slane %v574_v17, %v2254_v43 }
 0x239   : > { %v570_v24 = vrot.slane %v561_v15, 4  ;;  %v573_v25 = vsel %vm522_vm5, 0.0, %v572_v16  ;;  %v580_v26 = vsel %vm522_vm5, %v579_v18, %v567_v19  ;;  %v657_v30 = vsel %vm522_vm5, 0.0, %v656_v20 }
 0x23a   : > { %v584_v28 = vperm.slane %v580_v26, %v2254_v43  ;;  %v590_v29 = vrot.slane %v573_v25, 4  ;;  %1884 = vrot.lane.b32.xlu0 %v1883_v22, %s2047_s18  ;;  %v665_v32 = vperm.slane %v657_v30, %v2254_v43  ;;  %v666_v33 = vrot.slane %v661_v21, 4 }
 0x23b   : > { %v571_v31 = vsel %vm522_vm5, 0.0, %v570_v24  ;;  %v669_v34 = vsel %vm522_vm5, %v661_v21, %v668_v10  ;;  %v585_v35 = vsel %vm522_vm5, %v572_v16, %v561_v15 }
 0x23c   : > { %v591_v36 = vsel %vm522_vm5, %v590_v29, %v571_v31  ;;  %v596_v37 = vrot.slane %v584_v28, 4  ;;  %v677_v38 = vperm.slane %v669_v34, %v2259_v50  ;;  %v667_v40 = vsel %vm522_vm5, %v666_v33, %v651_v55 }
 0x23d   : > { %v595_v39 = vperm.slane %v591_v36, %v2254_v43  ;;  %v678_v41 = vrot.slane %v665_v32, 4  ;;  %v681_v42 = vsel %vm522_vm5, %v665_v32, %v680_v23  ;;  %v673_v45 = vperm.slane %v667_v40, %v2259_v50 }
 0x23e   : > { %v597_v44 = vsel %vm522_vm5, %v596_v37, %v578_v27  ;;  %v689_v46 = vperm.slane %v681_v42, %v2259_v50  ;;  %v692_v47 = vrot.slane %v677_v38, 4  ;;  %v589_v48 = vperm.slane %v585_v35, %v2254_v43 }
 0x23f   : > { %v601_v49 = vperm.slane %v597_v44, %v2259_v50  ;;  %v602_v51 = vrot.slane %v595_v39, 4  ;;  %v679_v52 = vsel %vm522_vm5, %v678_v41, %v655_v8  ;;  %v690_v54 = vrot.slane %v673_v45, 4 }
 0x240   : > { %v685_v53 = vperm.slane %v679_v52, %v2259_v50  ;;  %v693_v55 = vsel %vm522_vm5, 0.0, %v692_v47  ;;  %v696_v56 = vrot.slane %v689_v46, 4  ;;  %v756_v5 = vsel %vm522_vm5, %v692_v47, %v673_v45 }
 0x241   : > { %v603_v57 = vsel %vm522_vm5, %v602_v51, %v589_v48  ;;  %v610_v58 = vrot.slane %v601_v49, 4  ;;  %v761_v59 = vrot.slane %v693_v55, 4  ;;  %v691_v61 = vsel %vm522_vm5, 0.0, %v690_v54 }
 0x242   : > { %v607_v60 = vperm.slane %v603_v57, %v2259_v50  ;;  %v694_v62 = vrot.slane %v685_v53, 4  ;;  %v697_v63 = vsel %vm522_vm5, 0.0, %v696_v56  ;;  %v767_v11 = vsel %vm522_vm5, %v696_v56, %v685_v53 }
 0x243   : > { %v772_v4 = vrot.slane %v697_v63, 4  ;;  %v762_v6 = vsel %vm522_vm5, %v761_v59, %v691_v61  ;;  %v760_v14 = vperm.slane %v756_v5, %v2254_v43  ;;  %v771_v17 = vperm.slane %v767_v11, %v2254_v43 }
 0x244   : > { %v608_v7 = vrot.slane %v607_v60, 4  ;;  %v611_v8 = vsel %vm522_vm5, %v607_v60, %v610_v58  ;;  %v695_v9 = vsel %vm522_vm5, 0.0, %v694_v62  ;;  %v766_v10 = vperm.slane %v762_v6, %v2254_v43 }
 0x245   : > { %614 = vst.msk [vmem:[#allocation2 + $0x8] sm:$0xff] %vm612_vm6, %v611_v8  ;;  %v773_v12 = vsel %vm522_vm5, %v772_v4, %v695_v9 }
 0x246   : > { %v609_v13 = vsel %vm522_vm5, %v608_v7, %v601_v49  ;;  %v777_v15 = vperm.slane %v773_v12, %v2254_v43  ;;  %v778_v16 = vrot.slane %v766_v10, 4 }
 0x247   : > { %613 = vst.msk [vmem:[#allocation2] sm:$0xff] %vm612_vm6, %v609_v13 }
 0x248   : > { %v779_v18 = vsel %vm522_vm5, %v778_v16, %v760_v14  ;;  %v784_v19 = vrot.slane %v777_v15, 4  ;;  %v2048_v16 = vmov -inf  }
 0x249   : > { %v783_v20 = vperm.slane %v779_v18, %v2259_v50  ;;  %616 = vst.msk [vmem:[#allocation3] sm:$0xff] %vm615_vm7, %v2048_v16 }
 0x24a   : > { %v785_v21 = vsel %vm522_vm5, %v784_v19, %v771_v17  ;;  %617 = vst.msk [vmem:[#allocation3 + $0x8] sm:$0xff] %vm615_vm7, %v2048_v16 }
 0x24b   : > { %v789_v22 = vperm.slane %v785_v21, %v2259_v50  ;;  %v792_v23 = vrot.slane %v783_v20, 4 }
 0x24c   : > { %v833_v27 = vld [vmem:[#allocation2 + $0x8] sm:$0xff] }
 0x24d   : > { %v793_v24 = vsel %vm522_vm5, %v789_v22, %v792_v23  ;;  %v790_v25 = vrot.slane %v789_v22, 4 }
 0x24e   : > { %1757 = vmatpush.xpose.msk.msra.mxu3 %vm612_vm6, %v793_v24  ;;  %v832_v28 = vld [vmem:[#allocation2] sm:$0xff] }
 0x24f   : > { %v791_v26 = vsel %vm522_vm5, %v790_v25, %v783_v20 }
 0x250   : > { %1755 = vmatpush.xpose.msk.msra.mxu2 %vm612_vm6, %v791_v26  ;;  %v2049_v26 = vmov 0  }
 0x251   : > { %1758 = vmatmul.msk.f32.vlgmr.msra.gmra.mxu3 %vm612_vm6, %v833_v27  ;;  %1888 = vset.pattern.permute.xlu1 %v2049_v26  ;;  %v886_v27 = vld [vmem:[#allocation3] sm:$0xff] }
 0x252   : > { %1889 = vset.pattern.permute.xlu2 %v2049_v26  ;;  %1890 = vset.pattern.permute.xlu0 %v2049_v26 }
 0x253   : > { %1756 = vmatmul.msk.f32.vlgmr.msra.gmra.mxu2 %vm612_vm6, %v832_v28 }
 0x2ac   : > { %v1885_v29 = vpop.permute.xlu0 %1884 }
 0x2ad   : > { %v1887_v30 = vunpack.i.h.bf16 %v1885_v29  ;;  %v1886_v31 = vunpack.i.l.bf16 %v1885_v29 }
 0x2af   : > { %v714_v32 = vrot.slane %v1887_v30, 4  ;;  %v719_v33 = vperm.slane %v1887_v30, %v2254_v43  ;;  %v704_v34 = vrot.slane %v1886_v31, 4  ;;  %v709_v35 = vperm.slane %v1886_v31, %v2254_v43  ;;  %v887_v30 = vld [vmem:[#allocation3 + $0x8] sm:$0xff] }
 0x2b1   : > { %v715_v36 = vsel %vm522_vm5, 0.0, %v714_v32  ;;  %v724_v37 = vrot.slane %v719_v33, 4  ;;  %v705_v38 = vsel %vm522_vm5, 0.0, %v704_v34  ;;  %v726_v39 = vrot.slane %v709_v35, 4 }
 0x2b2   : > { %v723_v40 = vperm.slane %v715_v36, %v2254_v43  ;;  %v713_v41 = vperm.slane %v705_v38, %v2254_v43 }
 0x2b3   : > { %v725_v42 = vsel %vm522_vm5, %v724_v37, %v709_v35  ;;  %v727_v44 = vsel %vm522_vm5, %v719_v33, %v726_v39 }
 0x2b4   : > { %v736_v45 = vrot.slane %v723_v40, 4  ;;  %v731_v46 = vperm.slane %v725_v42, %v2259_v50  ;;  %v735_v47 = vperm.slane %v727_v44, %v2259_v50  ;;  %v738_v48 = vrot.slane %v713_v41, 4 }
 0x2b6   : > { %v737_v49 = vsel %vm522_vm5, %v736_v45, %v713_v41  ;;  %v739_v51 = vsel %vm522_vm5, %v723_v40, %v738_v48  ;;  %v748_v52 = vrot.slane %v731_v46, 4  ;;  %v750_v53 = vrot.slane %v735_v47, 4 }
 0x2b7   : > { %v743_v54 = vperm.slane %v737_v49, %v2259_v50  ;;  %v747_v55 = vperm.slane %v739_v51, %v2259_v50 }
 0x2b8   : > { %v751_v56 = vsel %vm522_vm5, 0.0, %v750_v53  ;;  %v749_v60 = vsel %vm522_vm5, 0.0, %v748_v52  ;;  %v794_v62 = vsel %vm522_vm5, %v750_v53, %v731_v46 }
 0x2b9   : > { %v752_v57 = vrot.slane %v743_v54, 4  ;;  %v754_v58 = vrot.slane %v747_v55, 4  ;;  %v799_v59 = vrot.slane %v751_v56, 4  ;;  %v798_v7 = vperm.slane %v794_v62, %v2254_v43 }
 0x2bb   : > { %v755_v61 = vsel %vm522_vm5, 0.0, %v754_v58  ;;  %v800_v63 = vsel %vm522_vm5, %v799_v59, %v749_v60  ;;  %v753_v6 = vsel %vm522_vm5, 0.0, %v752_v57  ;;  %v805_v8 = vsel %vm522_vm5, %v754_v58, %v743_v54 }
 0x2bc   : > { %v810_v4 = vrot.slane %v755_v61, 4  ;;  %v804_v5 = vperm.slane %v800_v63, %v2254_v43  ;;  %v809_v13 = vperm.slane %v805_v8, %v2254_v43 }
 0x2be   : > { %v811_v9 = vsel %vm522_vm5, %v810_v4, %v753_v6  ;;  %v816_v10 = vrot.slane %v804_v5, 4 }
 0x2bf   : > { %v815_v11 = vperm.slane %v811_v9, %v2254_v43 }
 0x2c0   : > { %v817_v12 = vsel %vm522_vm5, %v816_v10, %v798_v7 }
 0x2c1   : > { %v821_v14 = vperm.slane %v817_v12, %v2259_v50  ;;  %v822_v15 = vrot.slane %v815_v11, 4 }
 0x2c3   : > { %v823_v17 = vsel %vm522_vm5, %v822_v15, %v809_v13  ;;  %v830_v18 = vrot.slane %v821_v14, 4 }
 0x2c4   : > { %v827_v19 = vperm.slane %v823_v17, %v2259_v50  ;;  %v2050_v50 = vmov 0.0  }
 0x2c5   : > { %621 = vst.msk [vmem:[#allocation5 + $0x8] sm:$0xff] %vm612_vm6, %v2050_v50 }
 0x2c6   : > { %v831_v20 = vsel %vm522_vm5, %v827_v19, %v830_v18  ;;  %v828_v21 = vrot.slane %v827_v19, 4  ;;  %618 = vst.msk [vmem:[#allocation4] sm:$0xff] %vm615_vm7, %v2050_v50 }
 0x2c7   : > { %987 = vmatpush.msrb.mxu3 %v831_v20  ;;  %619 = vst.msk [vmem:[#allocation4 + $0x8] sm:$0xff] %vm615_vm7, %v2050_v50 }
 0x2c8   : > { %v829_v22 = vsel %vm522_vm5, %v828_v21, %v821_v14  ;;  %620 = vst.msk [vmem:[#allocation5] sm:$0xff] %vm612_vm6, %v2050_v50 }
 0x2c9   : > { %964 = vmatpush.msrb.mxu2 %v829_v22 }
 0x2cc   : > { %v933_v57 = vld [vmem:[#allocation5 + $0x8] sm:$0xff] }
 0x2cd   : > { %v918_v58 = vld [vmem:[#allocation4] sm:$0xff] }
 0x2ce   : > { %v919_v53 = vld [vmem:[#allocation4 + $0x8] sm:$0xff] }
 0x2cf   : > { %v932_v5 = vld [vmem:[#allocation5] sm:$0xff] }
 0x2d4   : > { %v883_v24 = vpop.f32.mrf.mxu3 }
 0x2d5   : > { %v891_v25 = vsel %vm612_vm6, %v883_v24, -inf }
 0x2d6   : > { %v857_v43 = vpop.f32.mrf.mxu2 }
 0x2d7   : > { %v888_v23 = vsel %vm612_vm6, %v857_v43, -inf }
 0x2d8   : > { %889 = vmax.xlane.f32.xlu2 %v888_v23 }
 0x2e0   : > { %892 = vmax.xlane.f32.xlu2 %v891_v25 }
 0x34b   : > { %v890_v28 = vpop.xlane.xlu2 %889 }
 0x34c   : > { %v894_v29 = vmax.f32 %v886_v27, %v890_v28 }
 0x34e   : > { %996 = vst.msk [vmem:[#allocation3] sm:$0xff] %vm615_vm7, %v894_v29  ;;  %904 = vperm.xlu1 %1888, %v894_v29   ;;  %v896_v35 = vsub.f32 %v886_v27, %v894_v29 }
 0x350   : > { %v898_v36 = vmul.f32 1.442695, %v896_v35 }
 0x353   : > { %v893_v31 = vpop.xlane.xlu2 %892 }
 0x354   : > { %v895_v32 = vmax.f32 %v887_v30, %v893_v31 }
 0x356   : > { %v897_v33 = vsub.f32 %v887_v30, %v895_v32  ;;  %997 = vst.msk [vmem:[#allocation3 + $0x8] sm:$0xff] %vm615_vm7, %v895_v32  ;;  %909 = vperm.xlu2 %1889, %v895_v32  }
 0x358   : > { %v900_v34 = vmul.f32 1.442695, %v897_v33 }
 0x35a   : > { %1897 = vpow2.f32 %v900_v34 }
 0x35b   : > { %1899 = vpow2.f32 %v898_v36 }
 0x360   : > { %v1898_v37 = vpop.eup %1897 }
 0x361   : > { %941 = vperm.xlu1 %1888, %v1898_v37   ;;  %v1900_v38 = vpop.eup %1899  ;;  %v921_v54 = vmul.f32 %v1898_v37, %v919_v53 }
 0x362   : > { %v920_v61 = vmul.f32 %v1900_v38, %v918_v58 }
 0x369   : > { %936 = vperm.xlu1 %1888, %v1900_v38  }
 0x3b0   : > { %v910_v39 = vpop.permute.xlu2 %909 }
 0x3b1   : > { %v913_v40 = vsub.f32 %v883_v24, %v910_v39 }
 0x3b3   : > { %v916_v41 = vmul.f32 1.442695, %v913_v40 }
 0x3b5   : > { %1901 = vpow2.f32 %v916_v41 }
 0x3bb   : > { %v1902_v42 = vpop.eup %1901 }
 0x3bc   : > { %1760 = vmatmul.msk.f32.vlgmr.msrb.gmra.mxu3 %vm612_vm6, %v1902_v42  ;;  %v925_v44 = vsel %vm612_vm6, %v1902_v42, 0.0 }
 0x3bd   : > { %926 = vadd.xlane.f32.xlu1 %v925_v44 }
 0x3c0   : > { %v905_v45 = vpop.permute.xlu1 %904 }
 0x3c1   : > { %v912_v46 = vsub.f32 %v857_v43, %v905_v45 }
 0x3c3   : > { %v914_v47 = vmul.f32 1.442695, %v912_v46 }
 0x3c5   : > { %1903 = vpow2.f32 %v914_v47 }
 0x3cb   : > { %v1904_v48 = vpop.eup %1903 }
 0x3cc   : > { %1759 = vmatmul.msk.f32.vlgmr.msrb.gmra.mxu2 %vm612_vm6, %v1904_v48  ;;  %v922_v49 = vsel %vm612_vm6, %v1904_v48, 0.0 }
 0x3cd   : > { %923 = vadd.xlane.f32.xlu0 %v922_v49 }
 0x3d3   : > { %v942_v51 = vpop.permute.xlu1 %941 }
 0x3d4   : > { %v945_v59 = vmul.f32 %v942_v51, %v933_v57 }
 0x3db   : > { %v937_v52 = vpop.permute.xlu1 %936 }
 0x3dc   : > { %v944_v6 = vmul.f32 %v937_v52, %v932_v5 }
 0x430   : > { %v927_v55 = vpop.xlane.xlu1 %926 }
 0x431   : > { %v929_v56 = vadd.f32 %v927_v55, %v921_v54 }
 0x433   : > { %931 = vst.msk [vmem:[#allocation4 + $0x8] sm:$0xff] %vm615_vm7, %v929_v56 }
 0x43f   : > { %v989_v60 = vpop.f32.mrf.mxu3 }
 0x440   : > { %v993_v62 = vadd.f32 %v989_v60, %v945_v59  ;;  %v924_v63 = vpop.xlane.xlu0 %923 }
 0x441   : > { %v928_v4 = vadd.f32 %v924_v63, %v920_v61 }
 0x442   : > { %995 = vst.msk [vmem:[#allocation5 + $0x8] sm:$0xff] %vm612_vm6, %v993_v62 }
 0x443   : > { %930 = vst.msk [vmem:[#allocation4] sm:$0xff] %vm615_vm7, %v928_v4 }
 0x44f   : > { %v966_v7 = vpop.f32.mrf.mxu2 }
 0x450   : > { %v992_v8 = vadd.f32 %v966_v7, %v944_v6 }
 0x452   : > { %994 = vst.msk [vmem:[#allocation5] sm:$0xff] %vm612_vm6, %v992_v8 }
 0x453 PF: > { %v998_v9 = vld [vmem:[%s2210_s25] sm:$0xff]  ;;  %vm1001_vm8 = vcmask 261120   ;;  %1063 = vmatpush.msra.mxu0 %v2232_v3  ;;  %v2051_v11 = vmov 32.0   ;;  %v1040_v24 = vlaneseq  ;;  %s1761_s24 = sshll.u32 %s2017_s12, 3  ;;  %s2052_s26 = smov 120   ;;  %vm1076_vm14 = vcmask 1047556  }
 0x454   : > { %v1002_v10 = vsel %vm1001_vm8, %v998_v9, 0.0  ;;  %1914 = vrcp.f32 %v2051_v11  ;;  %v2387_v27 = vstv %s1761_s24  ;;  %v1912_v29 = vld [vmem:[%s2600_s2] ss:$0 sm:$0xff]  ;;  %v2053_v38 = vmov 1983009808   ;;  %s2055_s21 = smov 112  }
 0x455   : > { %1003 = vadd.xlane.f32.xlu0 %v1002_v10  ;;  %1064 = vmatpush.msra.mxu0 %v2230_v2  ;;  %v1041_v50 = vshrl.u32 %v1040_v24, 7  ;;  %v1913_v33 = vld [vmem:[%s2601_s3] ss:$0 sm:$0xff]  ;;  %v1079_v39 = vunpack.c.l.s4 %v2053_v38  ;;  %v2054_v42 = vmov 1934713408   ;;  %vm1268_vm15 = vcmask 64512  }
 0x456   : > { %v1101_v44 = vunpack.c.l.s4 %v2054_v42  ;;  %vm1369_vm1 = vcmask 7168   ;;  %p1769_p3 = scmp.ne.s32.totalorder %s2017_s12, 2 }
 0x457   : > { %1065 = vmatpush.msra.mxu0 %v2228_v1  ;;  %v1043_v31 = vadd.s32 %v2387_v27, %v1041_v50  ;;  %v2401_v41 = vunpack.c.0.s8 %v1079_v39  ;;  %s2058_s12 = smov (!%p1769_p3), 8  }
 0x458   : > { %v2407_v48 = vunpack.c.0.s8 %v1101_v44  ;;  %v1325_v44 = vld [vmem:[#allocation3] sm:$0xff] }
 0x459   : > { %1066 = vmatpush.msra.mxu0 %v2226_v0  ;;  %vm1044_vm13 = vcmp.lt.s32.totalorder %v1043_v31, 20 }
 0x45a   : > { %v1915_v12 = vpop.eup %1914 }
 0x45b   : > { %v1006_v13 = vmul.f32 32.0, %v1915_v12  ;;  %vm1010_vm9 = vweird.f32 %v1915_v12 }
 0x45d   : > { %v1007_v14 = vsub.f32 1.0, %v1006_v13 }
 0x45f   : > { %v1008_v15 = vmul.f32 %v1915_v12, %v1007_v14 }
 0x461   : > { %v1009_v16 = vadd.f32 %v1915_v12, %v1008_v15 }
 0x463   : > { %v1011_v17 = vsel %vm1010_vm9, %v1915_v12, %v1009_v16 }
 0x4c8   : > { %v1004_v3 = vpop.xlane.xlu0 %1003 }
 0x4c9   : > { %v1012_v18 = vmul.f32 %v1011_v17, %v1004_v3 }
 0x4cb   : > { %v1013_v19 = vsub.f32 %v998_v9, %v1012_v18 }
 0x4cd   : > { %v1014_v20 = vmul.f32 %v1013_v19, %v1013_v19 }
 0x4cf   : > { %v1015_v2 = vsel %vm1001_vm8, %v1014_v20, 0.0 }
 0x4d0   : > { %1016 = vadd.xlane.f32.xlu0 %v1015_v2 }
 0x543   : > { %v1017_v1 = vpop.xlane.xlu0 %1016 }
 0x544   : > { %v1018_v21 = vmul.f32 %v1017_v1, %v1011_v17 }
 0x546   : > { %v1019_v0 = vadd.f32 1e-05, %v1018_v21 }
 0x548   : > { %1916 = vrsqrt.f32 %v1019_v0  ;;  %vm1026_vm11 = vweird.f32 %v1019_v0 }
 0x54e   : > { %v1917_v22 = vpop.eup %1916 }
 0x54f   : > { %v1021_v43 = vmul.f32 %v1917_v22, %v1019_v0  ;;  %vm1027_vm10 = vweird.f32 %v1917_v22 }
 0x550   : > { %vm1028_vm12 = vmor %vm1026_vm11, %vm1027_vm10 }
 0x551   : > { %v1022_v23 = vmul.f32 %v1917_v22, %v1021_v43 }
 0x553   : > { %v1023_v25 = vmul.f32 0.5, %v1022_v23 }
 0x555   : > { %v1024_v26 = vsub.f32 1.5, %v1023_v25 }
 0x557   : > { %v1025_v28 = vmul.f32 %v1917_v22, %v1024_v26 }
 0x559   : > { %v1029_v30 = vsel %vm1028_vm12, %v1917_v22, %v1025_v28 }
 0x55a   : > { %v1030_v32 = vmul.f32 %v1029_v30, %v1013_v19  ;;  %v1267_v30 = vld [vmem:[#allocation2 + $0x8] sm:$0xff] }
 0x55c   : > { %v1034_v34 = vmul.f32 %v1912_v29, %v1030_v32  ;;  %v1266_v32 = vld [vmem:[#allocation2] sm:$0xff] }
 0x55e   : > { %v1038_v35 = vadd.f32 %v1913_v33, %v1034_v34  ;;  %v1263_v33 = vand.u32 127, %v1040_v24 }
 0x560   : > { %v1047_v36 = vsel %vm1044_vm13, %v1038_v35, 0.0  ;;  %v1264_v34 = vadd.s32 %v1263_v33, %v2387_v27  ;;  %v2056_v27 = vmov 0  }
 0x561   : > { %1762 = vmatmul.msk.f32.vlgmr.msra.gmra.mxu0 %vm1001_vm8, %v1047_v36  ;;  %1910 = vset.pattern.permute.xlu0 %v2056_v27 }
 0x562   : > { %vm1265_vm0 = vcmp.lt.s32.totalorder %v1264_v34, 20  ;;  %1911 = vset.pattern.permute.xlu2 %v2056_v27 }
 0x5de   : > { %v2397_v37 = vpop.f32.mrf.mxu0 }
 0x5df   : > { %1072 = vrot.lane.b32.xlu1 %v2397_v37, %s2052_s26  ;;  %v1075_v40 = vrot.slane %v2397_v37, 4  ;;  %v1081_v46 = vperm.slane %v2397_v37, %v2401_v41 }
 0x5e1   : > { %v1077_v45 = vsel %vm1076_vm14, 0.0, %v1075_v40  ;;  %v1098_v51 = vrot.slane %v1081_v46, 4 }
 0x5e2   : > { %v1085_v47 = vperm.slane %v1077_v45, %v2401_v41 }
 0x5e4   : > { %v1110_v57 = vrot.slane %v1085_v47, 4 }
 0x651   : > { %v2409_v49 = vpop.permute.xlu1 %1072 }
 0x652   : > { %v1086_v52 = vrot.slane %v2409_v49, 4  ;;  %v1091_v53 = vperm.slane %v2409_v49, %v2401_v41  ;;  %v1905_v24 = vpack.i.bf16 %v2409_v49, %v2397_v37 }
 0x654   : > { %v1087_v54 = vsel %vm1076_vm14, 0.0, %v1086_v52  ;;  %v1096_v55 = vrot.slane %v1091_v53, 4  ;;  %v1099_v56 = vsel %vm1076_vm14, %v1091_v53, %v1098_v51 }
 0x655   : > { %v1095_v58 = vperm.slane %v1087_v54, %v2401_v41  ;;  %v1107_v59 = vperm.slane %v1099_v56, %v2407_v48 }
 0x656   : > { %v1097_v60 = vsel %vm1076_vm14, %v1096_v55, %v1081_v46 }
 0x657   : > { %v1108_v61 = vrot.slane %v1095_v58, 4  ;;  %v1103_v62 = vperm.slane %v1097_v60, %v2407_v48  ;;  %v1111_v63 = vsel %vm1076_vm14, %v1095_v58, %v1110_v57  ;;  %v1122_v4 = vrot.slane %v1107_v59, 4 }
 0x658   : > { %v1119_v5 = vperm.slane %v1111_v63, %v2407_v48 }
 0x659   : > { %v1109_v6 = vsel %vm1076_vm14, %v1108_v61, %v1085_v47  ;;  %v1120_v7 = vrot.slane %v1103_v62, 4  ;;  %v1123_v8 = vsel %vm1076_vm14, 0.0, %v1122_v4  ;;  %v1186_v15 = vsel %vm1076_vm14, %v1122_v4, %v1103_v62  ;;  %v1326_v47 = vld [vmem:[#allocation3 + $0x8] sm:$0xff] }
 0x65a   : > { %v1115_v9 = vperm.slane %v1109_v6, %v2407_v48  ;;  %v1126_v10 = vrot.slane %v1119_v5, 4  ;;  %v1191_v11 = vrot.slane %v1123_v8, 4  ;;  %v1190_v19 = vperm.slane %v1186_v15, %v2401_v41 }
 0x65b   : > { %v1121_v12 = vsel %vm1076_vm14, 0.0, %v1120_v7 }
 0x65c   : > { %v1124_v13 = vrot.slane %v1115_v9, 4  ;;  %v1127_v14 = vsel %vm1076_vm14, 0.0, %v1126_v10  ;;  %v1192_v16 = vsel %vm1076_vm14, %v1191_v11, %v1121_v12  ;;  %v1197_v20 = vsel %vm1076_vm14, %v1126_v10, %v1115_v9 }
 0x65d   : > { %v1202_v17 = vrot.slane %v1127_v14, 4  ;;  %v1196_v3 = vperm.slane %v1192_v16, %v2401_v41  ;;  %v1201_v22 = vperm.slane %v1197_v20, %v2401_v41 }
 0x65e   : > { %v1125_v18 = vsel %vm1076_vm14, 0.0, %v1124_v13 }
 0x65f   : > { %v1203_v2 = vsel %vm1076_vm14, %v1202_v17, %v1125_v18  ;;  %v1208_v1 = vrot.slane %v1196_v3, 4 }
 0x660   : > { %v1207_v21 = vperm.slane %v1203_v2, %v2401_v41 }
 0x661   : > { %v1209_v0 = vsel %vm1076_vm14, %v1208_v1, %v1190_v19 }
 0x662   : > { %v1213_v43 = vperm.slane %v1209_v0, %v2407_v48  ;;  %v1214_v23 = vrot.slane %v1207_v21, 4 }
 0x664   : > { %v1215_v25 = vsel %vm1076_vm14, %v1214_v23, %v1201_v22  ;;  %v1222_v26 = vrot.slane %v1213_v43, 4 }
 0x665   : > { %v1219_v50 = vperm.slane %v1215_v25, %v2407_v48 }
 0x667   : > { %v1223_v28 = vsel %vm1076_vm14, %v1219_v50, %v1222_v26  ;;  %v1220_v29 = vrot.slane %v1219_v50, 4 }
 0x668   : > { %1765 = vmatpush.xpose.msk.msra.mxu2 %vm1268_vm15, %v1223_v28 }
 0x669   : > { %v1221_v31 = vsel %vm1076_vm14, %v1220_v29, %v1213_v43 }
 0x66a   : > { %1763 = vmatpush.xpose.msk.msra.mxu1 %vm1268_vm15, %v1221_v31 }
 0x66b   : > { %1766 = vmatmul.msk.f32.vlgmr.msra.gmra.mxu2 %vm1268_vm15, %v1267_v30 }
 0x66d   : > { %1764 = vmatmul.msk.f32.vlgmr.msra.gmra.mxu1 %vm1268_vm15, %v1266_v32 }
 0x6ea   : > { %v1292_v35 = vpop.f32.mrf.mxu1 }
 0x6eb   : > { %v2448_v36 = vsel %vm1265_vm0, %v1292_v35, -inf }
 0x6ec   : > { %v1327_v38 = vsel %vm1268_vm15, %v2448_v36, -inf }
 0x6ed   : > { %1328 = vmax.xlane.f32.xlu1 %v1327_v38 }
 0x6ee   : > { %v1318_v39 = vpop.f32.mrf.mxu2 }
 0x6ef   : > { %v2452_v40 = vsel %vm1265_vm0, %v1318_v39, -inf }
 0x6f0   : > { %v1330_v42 = vsel %vm1268_vm15, %v2452_v40, -inf }
 0x6f1   : > { %1331 = vmax.xlane.f32.xlu2 %v1330_v42 }
 0x709   : > { %1906 = vrot.lane.b32.xlu2 %v1905_v24, %s2055_s21 }
 0x760   : > { %v1329_v45 = vpop.xlane.xlu1 %1328 }
 0x761   : > { %v1333_v46 = vmax.f32 %v1325_v44, %v1329_v45 }
 0x763   : > { %v1335_v51 = vsub.f32 %v1325_v44, %v1333_v46  ;;  %1436 = vst.msk [vmem:[#allocation3] sm:$0xff] %vm1369_vm1, %v1333_v46  ;;  %1343 = vperm.xlu0 %1910, %v1333_v46  }
 0x764   : > { %v1332_v52 = vpop.xlane.xlu2 %1331 }
 0x765   : > { %v1337_v53 = vmul.f32 1.442695, %v1335_v51  ;;  %v1334_v54 = vmax.f32 %v1326_v47, %v1332_v52 }
 0x767   : > { %1918 = vpow2.f32 %v1337_v53  ;;  %v1336_v55 = vsub.f32 %v1326_v47, %v1334_v54  ;;  %1437 = vst.msk [vmem:[#allocation3 + $0x8] sm:$0xff] %vm1369_vm1, %v1334_v54  ;;  %1348 = vperm.xlu2 %1911, %v1334_v54  }
 0x769   : > { %v1339_v37 = vmul.f32 1.442695, %v1336_v55 }
 0x76b   : > { %1920 = vpow2.f32 %v1339_v37 }
 0x76c   : > { %v1907_v49 = vpop.permute.xlu2 %1906 }
 0x76d   : > { %v2460_v56 = vpop.eup %1918  ;;  %v1909_v57 = vunpack.i.h.bf16 %v1907_v49  ;;  %v1908_v58 = vunpack.i.l.bf16 %v1907_v49 }
 0x76f   : > { %v1144_v59 = vrot.slane %v1909_v57, 4  ;;  %v1149_v60 = vperm.slane %v1909_v57, %v2401_v41  ;;  %v1134_v61 = vrot.slane %v1908_v58, 4  ;;  %v1139_v62 = vperm.slane %v1908_v58, %v2401_v41  ;;  %1376 = vperm.xlu2 %1911, %v2460_v56  }
 0x771   : > { %v1145_v63 = vsel %vm1076_vm14, 0.0, %v1144_v59  ;;  %v1154_v4 = vrot.slane %v1149_v60, 4  ;;  %v1135_v5 = vsel %vm1076_vm14, 0.0, %v1134_v61  ;;  %v1156_v6 = vrot.slane %v1139_v62, 4  ;;  %v1921_v11 = vpop.eup %1920 }
 0x772   : > { %v1153_v7 = vperm.slane %v1145_v63, %v2401_v41  ;;  %v1143_v8 = vperm.slane %v1135_v5, %v2401_v41  ;;  %v1372_v5 = vld [vmem:[#allocation5] sm:$0xff] }
 0x773   : > { %v1155_v9 = vsel %vm1076_vm14, %v1154_v4, %v1139_v62  ;;  %v1157_v10 = vsel %vm1076_vm14, %v1149_v60, %v1156_v6  ;;  %v1357_v62 = vld [vmem:[#allocation4] sm:$0xff] }
 0x774   : > { %v1166_v12 = vrot.slane %v1153_v7, 4  ;;  %v1161_v13 = vperm.slane %v1155_v9, %v2407_v48  ;;  %v1165_v14 = vperm.slane %v1157_v10, %v2407_v48  ;;  %v1168_v15 = vrot.slane %v1143_v8, 4  ;;  %v1373_v10 = vld [vmem:[#allocation5 + $0x8] sm:$0xff] }
 0x775   : > { %v1359_v63 = vmul.f32 %v2460_v56, %v1357_v62 }
 0x776   : > { %v1167_v16 = vsel %vm1076_vm14, %v1166_v12, %v1143_v8  ;;  %v1169_v17 = vsel %vm1076_vm14, %v1153_v7, %v1168_v15  ;;  %v1178_v3 = vrot.slane %v1161_v13, 4  ;;  %v1180_v18 = vrot.slane %v1165_v14, 4 }
 0x777   : > { %v1173_v19 = vperm.slane %v1167_v16, %v2407_v48  ;;  %v1177_v20 = vperm.slane %v1169_v17, %v2407_v48  ;;  %1381 = vperm.xlu2 %1911, %v1921_v11  }
 0x778   : > { %v1181_v2 = vsel %vm1076_vm14, 0.0, %v1180_v18  ;;  %v1179_v22 = vsel %vm1076_vm14, 0.0, %v1178_v3  ;;  %v1224_v23 = vsel %vm1076_vm14, %v1180_v18, %v1161_v13 }
 0x779   : > { %v1182_v1 = vrot.slane %v1173_v19, 4  ;;  %v1184_v21 = vrot.slane %v1177_v20, 4  ;;  %v1229_v0 = vrot.slane %v1181_v2, 4  ;;  %v1228_v29 = vperm.slane %v1224_v23, %v2401_v41 }
 0x77b   : > { %v1185_v43 = vsel %vm1076_vm14, 0.0, %v1184_v21  ;;  %v1230_v25 = vsel %vm1076_vm14, %v1229_v0, %v1179_v22  ;;  %v1183_v28 = vsel %vm1076_vm14, 0.0, %v1182_v1  ;;  %v1235_v30 = vsel %vm1076_vm14, %v1184_v21, %v1173_v19 }
 0x77c   : > { %v1240_v26 = vrot.slane %v1185_v43, 4  ;;  %v1234_v50 = vperm.slane %v1230_v25, %v2401_v41  ;;  %v1239_v35 = vperm.slane %v1235_v30, %v2401_v41 }
 0x77e   : > { %v1241_v31 = vsel %vm1076_vm14, %v1240_v26, %v1183_v28  ;;  %v1246_v32 = vrot.slane %v1234_v50, 4 }
 0x77f   : > { %v1245_v33 = vperm.slane %v1241_v31, %v2401_v41 }
 0x780   : > { %v1247_v34 = vsel %vm1076_vm14, %v1246_v32, %v1228_v29 }
 0x781   : > { %v1251_v38 = vperm.slane %v1247_v34, %v2407_v48  ;;  %v1252_v39 = vrot.slane %v1245_v33, 4 }
 0x783   : > { %v1253_v42 = vsel %vm1076_vm14, %v1252_v39, %v1239_v35  ;;  %v1260_v27 = vrot.slane %v1251_v38, 4 }
 0x784   : > { %v1257_v24 = vperm.slane %v1253_v42, %v2407_v48 }
 0x786   : > { %v1258_v44 = vrot.slane %v1257_v24, 4  ;;  %v1261_v46 = vsel %vm1076_vm14, %v1257_v24, %v1260_v27 }
 0x788   : > { %v1259_v45 = vsel %vm1076_vm14, %v1258_v44, %v1251_v38 }
 0x789   : > { %1404 = vmatpush.msra.mxu3 %v1259_v45 }
 0x78b   : > { %1427 = vmatpush.msrb.mxu3 %v1261_v46 }
 0x7c1   : > { %v1349_v47 = vpop.permute.xlu2 %1348 }
 0x7c2   : > { %v1352_v51 = vsub.f32 %v2452_v40, %v1349_v47  ;;  %v1358_v40 = vld [vmem:[#allocation4 + $0x8] sm:$0xff] }
 0x7c3   : > { %v1360_v59 = vmul.f32 %v1921_v11, %v1358_v40 }
 0x7c4   : > { %v1355_v52 = vmul.f32 1.442695, %v1352_v51 }
 0x7c6   : > { %1922 = vpow2.f32 %v1355_v52 }
 0x7c9   : > { %v1377_v6 = vpop.permute.xlu2 %1376 }
 0x7ca   : > { %v1384_v7 = vmul.f32 %v1377_v6, %v1372_v5 }
 0x7cc   : > { %v1923_v53 = vpop.eup %1922 }
 0x7cd   : > { %v1364_v54 = vsel %vm1268_vm15, %v1923_v53, 0.0 }
 0x7ce   : > { %1365 = vadd.xlane.f32.xlu0 %v1364_v54 }
 0x7d1   : > { %v1382_v11 = vpop.permute.xlu2 %1381 }
 0x7d2   : > { %v1385_v12 = vmul.f32 %v1382_v11, %v1373_v10 }
 0x7d5   : > { %v1344_v55 = vpop.permute.xlu0 %1343 }
 0x7d6   : > { %v1351_v37 = vsub.f32 %v2448_v36, %v1344_v55 }
 0x7d8   : > { %v1353_v49 = vmul.f32 1.442695, %v1351_v37 }
 0x7da   : > { %1924 = vpow2.f32 %v1353_v49 }
 0x7e0   : > { %v1925_v57 = vpop.eup %1924 }
 0x7e1   : > { %1767 = vmatmul.msk.f32.vlgmr.msra.gmra.mxu3 %vm1268_vm15, %v1925_v57  ;;  %v1361_v58 = vsel %vm1268_vm15, %v1925_v57, 0.0 }
 0x7e2   : > { %1362 = vadd.xlane.f32.xlu1 %v1361_v58 }
 0x7e9   : > { %1768 = vmatmul.msk.f32.vlgmr.msrb.gmra.mxu3 %vm1268_vm15, %v1923_v53 }
 0x841   : > { %v1366_v60 = vpop.xlane.xlu0 %1365 }
 0x842   : > { %v1368_v61 = vadd.f32 %v1366_v60, %v1360_v59 }
 0x844   : > { %1371 = vst.msk [vmem:[#allocation4 + $0x8] sm:$0xff] %vm1369_vm1, %v1368_v61 }
 0x855   : > { %v1363_v36 = vpop.xlane.xlu1 %1362 }
 0x856   : > { %v1367_v4 = vadd.f32 %v1363_v36, %v1359_v63 }
 0x858   : > { %1370 = vst.msk [vmem:[#allocation4] sm:$0xff] %vm1369_vm1, %v1367_v4 }
 0x864   : > { %v1406_v8 = vpop.f32.mrf.mxu3 }
 0x865   : > { %v1432_v9 = vadd.f32 %v1406_v8, %v1384_v7 }
 0x867   : > { %1434 = vst.msk [vmem:[#allocation5] sm:$0xff] %vm1268_vm15, %v1432_v9 }
 0x86b   : > { %1441 = sbr.rel (%p1769_p3) target bundleno = 2564 (0xa04), region = 64 }
 0x86c   : > { %v1429_v13 = vpop.f32.mrf.mxu3 }
 0x86d   : > { %v1433_v14 = vadd.f32 %v1429_v13, %v1385_v12 }
 0x86f   : > { %1435 = vst.msk [vmem:[#allocation5 + $0x8] sm:$0xff] %vm1268_vm15, %v1433_v14 }
 0x870   : > { %v1442_v56 = vld [vmem:[#allocation4] sm:$0xff]  ;;  %v1443_v15 = vld [vmem:[#allocation4 + $0x8] sm:$0xff]  ;;  %v2057_v16 = vmov 0   ;;  %v1452_v0 = vld [vmem:[#allocation5] sm:$0xff]  ;;  %vm1563_vm2 = vcmask 130048  }
 0x871   : > { %1926 = vset.pattern.permute.xlu0 %v2057_v16  ;;  %1927 = vrcp.f32 %v1442_v56  ;;  %v1562_v23 = vld [vmem:[%s2224_s16 + $0x8] sm:$0xff] }
 0x872   : > { %1929 = vrcp.f32 %v1443_v15  ;;  %1581 = vmatpush.msra.mxu0 %v1562_v23 }
 0x876   : > { %v1453_v26 = vld [vmem:[#allocation5 + $0x8] sm:$0xff] }
 0x877   : > { %v1928_v17 = vpop.eup %1927 }
 0x878   : > { %v1930_v3 = vpop.eup %1929  ;;  %v1446_v18 = vmul.f32 %v1928_v17, %v1442_v56 }
 0x879   : > { %v1447_v20 = vmul.f32 %v1930_v3, %v1443_v15 }
 0x87a   : > { %v1448_v19 = vsub.f32 2.0, %v1446_v18 }
 0x87b   : > { %v1449_v1 = vsub.f32 2.0, %v1447_v20 }
 0x87c   : > { %v1450_v2 = vmul.f32 %v1928_v17, %v1448_v19 }
 0x87d   : > { %v1451_v21 = vmul.f32 %v1930_v3, %v1449_v1  ;;  %v1561_v3 = vld [vmem:[%s2224_s16] sm:$0xff] }
 0x87e   : > { %1456 = vperm.xlu0 %1926, %v1450_v2   ;;  %1582 = vmatpush.msra.mxu0 %v1561_v3 }
 0x886   : > { %1461 = vperm.xlu0 %1926, %v1451_v21  }
 0x8f0   : > { %v1457_v22 = vpop.permute.xlu0 %1456 }
 0x8f1   : > { %v1464_v43 = vmul.f32 %v1457_v22, %v1452_v0 }
 0x8f3   : > { %v1466_v25 = vrot.slane %v1464_v43, 4  ;;  %v1471_v28 = vperm.slane %v1464_v43, %v2401_v41 }
 0x8f5   : > { %v1467_v50 = vsel %vm1076_vm14, 0.0, %v1466_v25  ;;  %v1488_v32 = vrot.slane %v1471_v28, 4 }
 0x8f6   : > { %v1475_v31 = vperm.slane %v1467_v50, %v2401_v41 }
 0x8f8   : > { %v1462_v29 = vpop.permute.xlu0 %1461  ;;  %v1500_v42 = vrot.slane %v1475_v31, 4 }
 0x8f9   : > { %v1465_v30 = vmul.f32 %v1462_v29, %v1453_v26 }
 0x8fb   : > { %v1476_v33 = vrot.slane %v1465_v30, 4  ;;  %v1481_v34 = vperm.slane %v1465_v30, %v2401_v41 }
 0x8fd   : > { %v1477_v35 = vsel %vm1076_vm14, 0.0, %v1476_v33  ;;  %v1486_v38 = vrot.slane %v1481_v34, 4  ;;  %v1489_v39 = vsel %vm1076_vm14, %v1481_v34, %v1488_v32 }
 0x8fe   : > { %v1485_v24 = vperm.slane %v1477_v35, %v2401_v41  ;;  %v1497_v27 = vperm.slane %v1489_v39, %v2407_v48 }
 0x8ff   : > { %v1487_v44 = vsel %vm1076_vm14, %v1486_v38, %v1471_v28 }
 0x900   : > { %v1493_v45 = vperm.slane %v1487_v44, %v2407_v48  ;;  %v1498_v46 = vrot.slane %v1485_v24, 4  ;;  %v1501_v47 = vsel %vm1076_vm14, %v1485_v24, %v1500_v42  ;;  %v1512_v51 = vrot.slane %v1497_v27, 4 }
 0x901   : > { %v1509_v52 = vperm.slane %v1501_v47, %v2407_v48 }
 0x902   : > { %v1510_v53 = vrot.slane %v1493_v45, 4  ;;  %v1513_v54 = vsel %vm1076_vm14, 0.0, %v1512_v51  ;;  %v1499_v55 = vsel %vm1076_vm14, %v1498_v46, %v1475_v31  ;;  %v1518_v60 = vsel %vm1076_vm14, %v1512_v51, %v1493_v45 }
 0x903   : > { %v1516_v37 = vrot.slane %v1509_v52, 4  ;;  %v1523_v49 = vrot.slane %v1513_v54, 4  ;;  %v1505_v57 = vperm.slane %v1499_v55, %v2407_v48  ;;  %v1522_v4 = vperm.slane %v1518_v60, %v2401_v41 }
 0x904   : > { %v1511_v58 = vsel %vm1076_vm14, 0.0, %v1510_v53 }
 0x905   : > { %v1514_v40 = vrot.slane %v1505_v57, 4  ;;  %v1517_v59 = vsel %vm1076_vm14, 0.0, %v1516_v37  ;;  %v1524_v61 = vsel %vm1076_vm14, %v1523_v49, %v1511_v58  ;;  %v1529_v5 = vsel %vm1076_vm14, %v1516_v37, %v1505_v57 }
 0x906   : > { %v1528_v62 = vperm.slane %v1524_v61, %v2401_v41  ;;  %v1534_v63 = vrot.slane %v1517_v59, 4  ;;  %v1533_v10 = vperm.slane %v1529_v5, %v2401_v41 }
 0x907   : > { %v1515_v36 = vsel %vm1076_vm14, 0.0, %v1514_v40 }
 0x908   : > { %v1535_v6 = vsel %vm1076_vm14, %v1534_v63, %v1515_v36  ;;  %v1540_v7 = vrot.slane %v1528_v62, 4 }
 0x909   : > { %v1539_v8 = vperm.slane %v1535_v6, %v2401_v41 }
 0x90a   : > { %v1541_v9 = vsel %vm1076_vm14, %v1540_v7, %v1522_v4 }
 0x90b   : > { %v1545_v11 = vperm.slane %v1541_v9, %v2407_v48  ;;  %v1546_v12 = vrot.slane %v1539_v8, 4 }
 0x90d   : > { %v1547_v13 = vsel %vm1076_vm14, %v1546_v12, %v1533_v10  ;;  %v1554_v14 = vrot.slane %v1545_v11, 4 }
 0x90e   : > { %v1551_v56 = vperm.slane %v1547_v13, %v2407_v48 }
 0x910   : > { %v1555_v15 = vsel %vm1076_vm14, %v1551_v56, %v1554_v14  ;;  %v1552_v16 = vrot.slane %v1551_v56, 4 }
 0x911   : > { %1557 = vrot.lane.b32.xlu1 %v1555_v15, %s2058_s12 }
 0x912   : > { %v1553_v17 = vsel %vm1076_vm14, %v1552_v16, %v1545_v11 }
 0x983   : > { %v1558_v41 = vpop.permute.xlu1 %1557 }
 0x984   : > { %v1560_v18 = vsel %vm1268_vm15, %v1553_v17, %v1558_v41 }
 0x985   : > { %1770 = vmatmul.msk.f32.vlgmr.msra.gmra.mxu0 %vm1563_vm2, %v1560_v18 }
 0xa02   : > { %v1584_v19 = vpop.f32.mrf.mxu0 }
 0xa03   : > { %1587 = vst.msk [vmem:[%s412_s9] sm:$0xff] %vm1001_vm8, %v1584_v19 }
 0xa04 PF: > { %s2639_s23 = sld [smem:[#allocation10_spill]]  ;;  %s1772_s27 = sshll.u32 %s2025_s14, 1 }
 0xa05   : > { %s1599_s30 = sadd.s32 %s2021_s13, %s1772_s27  ;;  %s1603_s16 = sshll.u32 %s412_s9, 4  ;;  %s1604_s16 = int_to_ptr.vmem [resolvable:$true] %s1603_s16 }
 0xa06   : > { %s1773_s10 = sshll.u32 %s1599_s30, 3  ;;  %s2641_s17 = sld [smem:[#allocation22_spill]] }
 0xa0a   : > { %s2643_s19 = sand.u32 1, %s2639_s23  }
 0xa0b   : > { %s1589_s20 = scalar_lea.sflag [#allocation7], %s2643_s19 }
 0xa0c   : > { %s2642_s24 = smov %s2641_s17  ;;  %s1601_s18 = scalar_lea.hbm %s2641_s17, %s1773_s10 }
 0xa0d   : > { %s1605_s25 = sshll.u32 %s1601_s18, 4  ;;  %s1951_s22 = scalar_lea.hbm %s2642_s24, 32  ;;  %s1606_s25 = int_to_ptr.hbm [resolvable:$true] %s1605_s25 }
 0xa0e   : > { %s1945_s28 = sshra.s32 %s1606_s25, 4  ;;  %s1946_s28 = int_to_ptr.hbm [resolvable:$true] %s1945_s28 }
 0xa0f   : > { %s1947_s26 = scalar_lea.hbm %s1946_s28, 8  ;;  %p1952_p9 = scmp.lt.s32.totalorder %s1946_s28, %s2642_s24 }
 0xa10   : > { %p1948_p4 = scmp.ne.s32.totalorder %s1946_s28, %s1947_s26  ;;  %p1953_p10 = scmp.lt.s32.totalorder %s1951_s22, %s1947_s26 }
 0xa12   : > { %p1949_p5 = pnand %p1948_p4, %p2171_p6  ;;  %p1954_p11 = por %p1953_p10, %p1952_p9 }
 0xa14   : > { %p1950_p8 = pneg %p1949_p5 }
 0xa16   : > { %p1955_p12 = pnand %p1954_p11, %p1950_p8 }
 0xa18   : > { %1958 = shalt.err (!%p1955_p12)
}
 0xa19   : > { %1780 = dma.vmem_to_hbm [thread:$0]  (%p2171_p6), %s1604_s16, 128, %s1606_s25, %s1589_s20  }
 0xa1a PF: > { %s2644_s12 = sld [smem:[#allocation15_spill]] }
 0xa1b   : > { %s2645_s23 = sld [smem:[#allocation9_spill]] }
 0xa20   : > { %p1786_p13 = scmp.ge.s32.totalorder %s2644_s12, 2 }
 0xa21   : > { %s1617_s30 = sand.u32 1, %s2645_s23  }
 0xa22   : > { %p1783_p0 = pnand %p1786_p13, %p2178_p7  ;;  %s1618_s10 = scalar_lea.sflag [#allocation7], %s1617_s30 }
 0xa24   : > { %p1784_p1 = pneg %p1783_p0 }
 0xa26   : > { %2000 = dma.done.wait (%p1784_p1), %s1618_s10, 128  }
 0xa27   : > { %2002 = vsyncadd (%p1784_p1), %s1618_s10, 4294967168  ;;  %s22_s18 = sadd.s32 1, %s2644_s12   ;;  %s2647_s30 = sld [smem:[#allocation10_spill]] }
 0xa28   : > { %p19_p2 = scmp.ge.s32.totalorder %s22_s18, 14   ;;  %s2648_s10 = sld [smem:[#allocation11_spill]] }
 0xa29   : > { %s2649_s11 = sld [smem:[#allocation21_spill]] }
 0xa2a   : > { %s2650_s12 = sld [smem:[#allocation12_spill]] }
 0xa2b   : > { %s2651_s13 = sld [smem:[#allocation13_spill]]  ;;  %21 = sbr.rel (!%p19_p2) target bundleno = 8 (0x8), region = 111 }
 0xa2c   : > { %s2652_s14 = sld [smem:[#allocation14_spill]] }
 0xa2d   : > { %s2653_s15 = sld [smem:[#allocation16_spill]] }
 0xa2e   : > { %s2654_s16 = sld [smem:[#allocation18_spill]] }
 0xa2f   : > { %s2655_s17 = sld [smem:[#allocation20_spill]] }
 0xa30   :  { %1624 = vsyncpa [#allocation7], 1 }
 0xa31   :  { %1626 = vsyncpa [#allocation7 + $0x1], 1 }

</bundles_post_ra>
